<compile_context>
chip_gen: v5e
topology: v5e:2x2
jax: 0.10.0
libtpu: 0.0.40
codegen_flags: <defaults>
</compile_context>

<pallas_src>
import jax
import jax.numpy as jnp
from jax.experimental import pallas as pl
from jax.experimental.pallas import tpu as pltpu

EPS = 1e-5  # nn.BatchNorm1d default eps


def _row_to_col(row):
    """(1, L) -> (L, 1) without a degenerate-shape transpose.

    Broadcast the row over L sublanes, mask the diagonal, lane-reduce (XLU).
    L is at most a few hundred here, so this is a handful of vregs.
    """
    l = row.shape[1]
    i = jax.lax.broadcasted_iota(jnp.int32, (l, l), 0)
    j = jax.lax.broadcasted_iota(jnp.int32, (l, l), 1)
    diag = jnp.where(i == j, jnp.broadcast_to(row, (l, l)), 0.0)
    return jnp.sum(diag, axis=1, keepdims=True)


def _group_matrix(d, fold):
    """(L, L) 0/1 matrix with G[p, q] = 1 iff lanes p and q are the same feature.

    row @ G sums a per-(group, feature) row over the `fold` lane groups and leaves the
    per-feature result replicated into every group — exactly the row-parameter layout
    the folded batch needs for BN scale / shift.
    """
    l = fold * d
    i = jax.lax.broadcasted_iota(jnp.int32, (l, l), 0)
    j = jax.lax.broadcasted_iota(jnp.int32, (l, l), 1)
    return jnp.where((i % d) == (j % d), 1.0, 0.0)


def _make_kernel(num_hidden, fold, hidden_group_dims):
    """Fused Encoder kernel for a fixed (static) layer configuration."""

    def kernel(*refs):
        # refs layout:
        #   refs[0]                    : x folded (N/fold, fold*D_in) f32        [VMEM]
        #   refs[1] (if num_hidden>0)  : alphas (num_hidden,) f32                [SMEM]
        #   per hidden layer l         : W_bd (L_in, L_out) bf16,
        #                                pgb  (3, L_out) f32 = [bias;gamma;beta] [VMEM]
        #   final block                : W_bd (L_last, fold*E) bf16,
        #                                b    (1, fold*E) f32                    [VMEM]
        #   refs[-1]                   : out (N/fold, fold*E) f32                [VMEM]
        x_ref = refs[0]
        out_ref = refs[-1]
        rest = refs[1:-1]

        idx = 0
        alphas_ref = None
        if num_hidden > 0:
            alphas_ref = rest[0]
            idx = 1

        h = x_ref[...]                          # f32 activations
        inv_n = 1.0 / float(x_ref.shape[0] * fold)
        scale_row = None                        # pending BN scale (1, L), per-group replicated
        shift_row = None                        # pending BN shift (1, L)

        def fused_linear(h, w_ref, bias_row, scale_row, shift_row):
            w = w_ref[...]                      # bf16 (pre-cast in the wrapper)
            if scale_row is None:
                w_eff = w
                b_eff = bias_row
            else:
                # Fold the pending BatchNorm into this Linear:
                #   BN(h) @ W + b == h @ (scale_col * W) + (shift @ W + b)
                scale_col = _row_to_col(scale_row)                      # (L_in, 1)
                w_eff = (w * scale_col).astype(jnp.bfloat16)            # O(L_in*L_out)
                b_eff = jnp.dot(shift_row.astype(jnp.bfloat16), w,
                                preferred_element_type=jnp.float32) + bias_row
            # bf16 MXU operands, f32 accumulation.
            return jnp.dot(h.astype(jnp.bfloat16), w_eff,
                           preferred_element_type=jnp.float32) + b_eff

        for l in range(num_hidden):
            w_ref, pgb_ref = rest[idx], rest[idx + 1]
            idx += 2
            d_out = hidden_group_dims[l]

            pgb = pgb_ref[...]                                          # (3, L_out)
            bias_row, gamma_row, beta_row = pgb[0:1, :], pgb[1:2, :], pgb[2:3, :]

            z = fused_linear(h, w_ref, bias_row, scale_row, shift_row)

            # PReLU (single shared alpha, scalar read from SMEM).
            alpha = alphas_ref[l]
            z = jnp.where(z >= 0.0, z, alpha * z)

            # BatchNorm1d statistics only (training mode: batch mean, biased variance).
            # Two-pass / centered variance; cross-lane-group reduce via a tiny matmul.
            g_mat = _group_matrix(d_out, fold) if fold > 1 else None

            row_sum = jnp.sum(z, axis=0, keepdims=True)
            if g_mat is not None:
                row_sum = jnp.dot(row_sum, g_mat, preferred_element_type=jnp.float32)
            mean = row_sum * inv_n

            c = z - mean
            csq_sum = jnp.sum(c * c, axis=0, keepdims=True)
            if g_mat is not None:
                csq_sum = jnp.dot(csq_sum, g_mat, preferred_element_type=jnp.float32)
            var = csq_sum * inv_n

            scale_row = gamma_row * jax.lax.rsqrt(var + EPS)
            shift_row = beta_row - mean * scale_row
            h = z

        # Final Linear(d_last, embedding_dimension), with the last BN folded in.
        w_ref, b_ref = rest[idx], rest[idx + 1]
        out = fused_linear(h, w_ref, b_ref[...], scale_row, shift_row)
        out_ref[...] = out.astype(out_ref.dtype)

    return kernel


def encoder_layer_sizes(input_dimension, hidden_layer_size, hidden_layers,
                        embedding_dimension):
    """Mirror the PyTorch module's layer-size bookkeeping."""
    hidden = []
    current = input_dimension
    nxt = hidden_layer_size
    for i in range(hidden_layers):
        if i != 0:
            current = nxt
            nxt = max(int(nxt / 2), embedding_dimension)
        hidden.append((current, nxt))
    final_in = nxt if hidden_layers > 0 else input_dimension
    return hidden, (final_in, embedding_dimension)


def init_params(key, input_dimension, hidden_layer_size, hidden_layers,
                embedding_dimension):
    """Deterministic parameter init matching the PyTorch module's shapes/defaults."""
    hidden_sizes, final_size = encoder_layer_sizes(
        input_dimension, hidden_layer_size, hidden_layers, embedding_dimension)

    hidden_params = []
    for din, dout in hidden_sizes:
        key, kw, kb = jax.random.split(key, 3)
        bound = 1.0 / float(din) ** 0.5
        hidden_params.append(dict(
            # PyTorch Linear weight is (out, in); stored transposed as (in, out).
            w_t=jax.random.uniform(kw, (din, dout), jnp.float32, -bound, bound),
            b=jax.random.uniform(kb, (1, dout), jnp.float32, -bound, bound),
            alpha=jnp.full((1, 1), 0.25, jnp.float32),        # nn.PReLU default init
            bn_gamma=jnp.ones((1, dout), jnp.float32),         # nn.BatchNorm1d defaults
            bn_beta=jnp.zeros((1, dout), jnp.float32),
        ))

    din, dout = final_size
    key, kw, kb = jax.random.split(key, 3)
    bound = 1.0 / float(din) ** 0.5
    final_params = dict(
        w_t=jax.random.uniform(kw, (din, dout), jnp.float32, -bound, bound),
        b=jax.random.uniform(kb, (1, dout), jnp.float32, -bound, bound),
    )
    return hidden_params, final_params


def _block_diag_bf16(w, fold):
    """kron(I_fold, w), pre-cast to bf16 in the wrapper (per perf review)."""
    if fold == 1:
        return w.astype(jnp.bfloat16)
    return jnp.kron(jnp.eye(fold, dtype=w.dtype), w).astype(jnp.bfloat16)


def _tile_row(r, fold):
    return r if fold == 1 else jnp.tile(r, (1, fold))


def encoder_forward(x, hidden_params, final_params):
    n, d_in = x.shape
    num_hidden = len(hidden_params)
    e = final_params["w_t"].shape[1]

    # Instance-fold the batch into lanes (8 rows -> one lane-dense vreg row).
    # BN statistics still span the whole batch (cross-group reduce in-kernel).
    fold = 1
    for f in (8, 4, 2):
        if n % f == 0:
            fold = f
            break
    nf = n // fold
    x_f = x.astype(jnp.float32).reshape(nf, fold * d_in)   # row-major fold: free reshape

    vmem = pl.BlockSpec(memory_space=pltpu.MemorySpace.VMEM)
    smem = pl.BlockSpec(memory_space=pltpu.MemorySpace.SMEM)

    operands = [x_f]
    specs = [vmem]
    hidden_group_dims = []

    if num_hidden > 0:
        alphas = jnp.concatenate(
            [lp["alpha"].reshape(1) for lp in hidden_params]).astype(jnp.float32)
        operands.append(alphas)       # one 1-D SMEM array, not per-layer (1,1) scalars
        specs.append(smem)

    for lp in hidden_params:
        d_out = lp["w_t"].shape[1]
        hidden_group_dims.append(d_out)
        w_bd = _block_diag_bf16(lp["w_t"], fold)
        pgb = jnp.concatenate([_tile_row(lp["b"], fold),
                               _tile_row(lp["bn_gamma"], fold),
                               _tile_row(lp["bn_beta"], fold)], axis=0)  # (3, L) f32
        operands += [w_bd, pgb]
        specs += [vmem, vmem]

    operands += [_block_diag_bf16(final_params["w_t"], fold),
                 _tile_row(final_params["b"], fold)]
    specs += [vmem, vmem]

    out_shape = jax.ShapeDtypeStruct((nf, fold * e), jnp.float32)

    # Explicit VMEM budget: resident operands + a few live activation-sized f32 temps
    # + iota/group-matrix temps, with 2x headroom, capped well under v7x's 64 MiB/TC.
    widths = [d_in] + hidden_group_dims + [e]
    max_lanes = fold * max(widths)
    resident = sum(int(a.size) * a.dtype.itemsize for a in operands)
    resident += nf * fold * e * 4                 # output
    resident += 4 * nf * max_lanes * 4            # live activation temps
    resident += 3 * max_lanes * max_lanes * 4     # iota / group-matrix temps
    vmem_limit = int(min(max(2 * resident, 4 << 20), 40 << 20))

    out_f = pl.pallas_call(
        _make_kernel(num_hidden, fold, hidden_group_dims),
        out_shape=out_shape,
        in_specs=specs,
        out_specs=vmem,
        compiler_params=pltpu.CompilerParams(vmem_limit_bytes=vmem_limit),
    )(*operands)

    return out_f.reshape(n, e)


def encoder_ref(x, hidden_params, final_params):
    """Pure-JAX reference mirroring the PyTorch forward (training-mode BatchNorm)."""
    h = x.astype(jnp.float32)
    for lp in hidden_params:
        h = h @ lp["w_t"] + lp["b"]
        h = jnp.where(h >= 0.0, h, lp["alpha"][0, 0] * h)
        mean = jnp.mean(h, axis=0, keepdims=True)
        var = jnp.mean(jnp.square(h - mean), axis=0, keepdims=True)
        h = (h - mean) / jnp.sqrt(var + EPS) * lp["bn_gamma"] + lp["bn_beta"]
    return h @ final_params["w_t"] + final_params["b"]


def _check(x, hidden_params, final_params, atol=3e-2, rtol=3e-2):
    out = jax.block_until_ready(encoder_forward(x, hidden_params, final_params))
    ref = encoder_ref(x, hidden_params, final_params)
    assert out.shape == ref.shape
    err = float(jnp.max(jnp.abs(out - ref)))
    # bf16 MXU operands with f32 accumulation -> relaxed (structural-bug-detecting)
    # tolerance vs. the all-f32 reference.
    assert jnp.allclose(out, ref, atol=atol, rtol=rtol), err
    return out


if __name__ == "__main__":
    # Small shapes consistent with the module: batch=16, input_dimension=16,
    # hidden_layer_size=32, hidden_layers=2, embedding_dimension=8.
    # Hidden Linear sizes follow the module: (16->32), (32->16), final (16->8).
    batch, input_dimension = 16, 16
    hidden_layer_size, hidden_layers, embedding_dimension = 32, 2, 8

    key = jax.random.PRNGKey(0)
    key, kx = jax.random.split(key)
    x = jax.random.normal(kx, (batch, input_dimension), jnp.float32)

    hidden_params, final_params = init_params(
        key, input_dimension, hidden_layer_size, hidden_layers, embedding_dimension)

    out = _check(x, hidden_params, final_params)
    assert out.shape == (batch, embedding_dimension)

    # hidden_layers == 0 path: a single Linear(input, embedding).
    h0_hidden, h0_final = init_params(
        jax.random.PRNGKey(1), input_dimension, hidden_layer_size, 0,
        embedding_dimension)
    _check(x, h0_hidden, h0_final)

    # Unfolded (fold == 1) fallback path: batch not divisible by 2.
    _check(x[:15], hidden_params, final_params)

    print("KERNEL_OK")
</pallas_src>

<mosaic_0001>
module attributes {stable_mosaic.version = 11 : i64} {
  func.func @kernel(%arg0: memref<2x128xf32, #tpu.memory_space<vmem>>, %arg1: memref<2xf32, #tpu.memory_space<smem>>, %arg2: memref<128x256xbf16, #tpu.memory_space<vmem>>, %arg3: memref<3x256xf32, #tpu.memory_space<vmem>>, %arg4: memref<256x128xbf16, #tpu.memory_space<vmem>>, %arg5: memref<3x128xf32, #tpu.memory_space<vmem>>, %arg6: memref<128x64xbf16, #tpu.memory_space<vmem>>, %arg7: memref<1x64xf32, #tpu.memory_space<vmem>>, %arg8: memref<2x64xf32, #tpu.memory_space<vmem>>) attributes {dimension_semantics = [], scalar_prefetch = 0 : i64, scratch_operands = 0 : i64, tpu.core_type = #tpu.core_type<tc>} {
    %c0 = arith.constant 0 : index
    %c0_0 = arith.constant 0 : index
    %0 = vector.load %arg0[%c0, %c0_0] : memref<2x128xf32, #tpu.memory_space<vmem>>, vector<2x128xf32>
    %c0_1 = arith.constant 0 : index
    %c0_2 = arith.constant 0 : index
    %1 = vector.load %arg3[%c0_1, %c0_2] : memref<3x256xf32, #tpu.memory_space<vmem>>, vector<3x256xf32>
    %2 = vector.extract_strided_slice %1 {offsets = [0, 0], sizes = [1, 256], strides = [1, 1]} : vector<3x256xf32> to vector<1x256xf32>
    %3 = vector.extract_strided_slice %1 {offsets = [1, 0], sizes = [1, 256], strides = [1, 1]} : vector<3x256xf32> to vector<1x256xf32>
    %4 = vector.extract_strided_slice %1 {offsets = [2, 0], sizes = [1, 256], strides = [1, 1]} : vector<3x256xf32> to vector<1x256xf32>
    %c0_3 = arith.constant 0 : index
    %c0_4 = arith.constant 0 : index
    %5 = vector.load %arg2[%c0_3, %c0_4] : memref<128x256xbf16, #tpu.memory_space<vmem>>, vector<128x256xbf16>
    %6 = arith.truncf %0 : vector<2x128xf32> to vector<2x128xbf16>
    %cst = arith.constant dense<0.000000e+00> : vector<2x256xf32>
    %7 = tpu.matmul %6, %5, %cst {dimension_numbers = #tpu.dot_dimension_numbers<[1], [0], [0], [1], [0, 0, 1, 1], [], []>} : vector<2x128xbf16>, vector<128x256xbf16>, vector<2x256xf32> -> vector<2x256xf32>
    %8 = vector.broadcast %2 : vector<1x256xf32> to vector<2x256xf32>
    %9 = arith.addf %7, %8 : vector<2x256xf32>
    %c0_5 = arith.constant 0 : index
    %10 = memref.load %arg1[%c0_5] : memref<2xf32, #tpu.memory_space<smem>>
    %cst_6 = arith.constant 0.000000e+00 : f32
    %11 = vector.broadcast %cst_6 : f32 to vector<2x256xf32>
    %12 = arith.cmpf oge, %9, %11 : vector<2x256xf32>
    %13 = vector.broadcast %10 : f32 to vector<2x256xf32>
    %14 = arith.mulf %13, %9 : vector<2x256xf32>
    %15 = arith.select %12, %9, %14 : vector<2x256xi1>, vector<2x256xf32>
    %16 = tpu.iota {dimensions = array<i32: 0>} : vector<256x256xi32>
    %17 = tpu.iota {dimensions = array<i32: 1>} : vector<256x256xi32>
    %c32_i32 = arith.constant 32 : i32
    %c0_i32 = arith.constant 0 : i32
    %18 = arith.cmpi eq, %c32_i32, %c0_i32 : i32
    %c1_i32 = arith.constant 1 : i32
    %19 = arith.select %18, %c1_i32, %c32_i32 : i32
    %20 = vector.broadcast %19 : i32 to vector<256x256xi32>
    %21 = arith.remsi %16, %20 : vector<256x256xi32>
    %c0_i32_7 = arith.constant 0 : i32
    %22 = vector.broadcast %c0_i32_7 : i32 to vector<256x256xi32>
    %23 = arith.cmpi ne, %21, %22 : vector<256x256xi32>
    %c0_i32_8 = arith.constant 0 : i32
    %24 = vector.broadcast %c0_i32_8 : i32 to vector<256x256xi32>
    %25 = arith.cmpi slt, %21, %24 : vector<256x256xi32>
    %c0_i32_9 = arith.constant 0 : i32
    %26 = arith.cmpi slt, %19, %c0_i32_9 : i32
    %27 = vector.broadcast %26 : i1 to vector<256x256xi1>
    %28 = vector.broadcast %27 : vector<256x256xi1> to vector<256x256xi1>
    %29 = arith.xori %25, %28 : vector<256x256xi1>
    %30 = arith.andi %29, %23 : vector<256x256xi1>
    %31 = vector.broadcast %19 : i32 to vector<256x256xi32>
    %32 = arith.addi %21, %31 : vector<256x256xi32>
    %33 = arith.select %30, %32, %21 : vector<256x256xi1>, vector<256x256xi32>
    %c32_i32_10 = arith.constant 32 : i32
    %c0_i32_11 = arith.constant 0 : i32
    %34 = arith.cmpi eq, %c32_i32_10, %c0_i32_11 : i32
    %c1_i32_12 = arith.constant 1 : i32
    %35 = arith.select %34, %c1_i32_12, %c32_i32_10 : i32
    %36 = vector.broadcast %35 : i32 to vector<256x256xi32>
    %37 = arith.remsi %17, %36 : vector<256x256xi32>
    %c0_i32_13 = arith.constant 0 : i32
    %38 = vector.broadcast %c0_i32_13 : i32 to vector<256x256xi32>
    %39 = arith.cmpi ne, %37, %38 : vector<256x256xi32>
    %c0_i32_14 = arith.constant 0 : i32
    %40 = vector.broadcast %c0_i32_14 : i32 to vector<256x256xi32>
    %41 = arith.cmpi slt, %37, %40 : vector<256x256xi32>
    %c0_i32_15 = arith.constant 0 : i32
    %42 = arith.cmpi slt, %35, %c0_i32_15 : i32
    %43 = vector.broadcast %42 : i1 to vector<256x256xi1>
    %44 = vector.broadcast %43 : vector<256x256xi1> to vector<256x256xi1>
    %45 = arith.xori %41, %44 : vector<256x256xi1>
    %46 = arith.andi %45, %39 : vector<256x256xi1>
    %47 = vector.broadcast %35 : i32 to vector<256x256xi32>
    %48 = arith.addi %37, %47 : vector<256x256xi32>
    %49 = arith.select %46, %48, %37 : vector<256x256xi1>, vector<256x256xi32>
    %50 = arith.cmpi eq, %33, %49 : vector<256x256xi32>
    %cst_16 = arith.constant 1.000000e+00 : f32
    %cst_17 = arith.constant 0.000000e+00 : f32
    %51 = vector.broadcast %cst_16 : f32 to vector<256x256xf32>
    %52 = vector.broadcast %cst_17 : f32 to vector<256x256xf32>
    %53 = arith.select %50, %51, %52 : vector<256x256xi1>, vector<256x256xf32>
    %cst_18 = arith.constant dense<0.000000e+00> : vector<256xf32>
    %54 = vector.multi_reduction <add>, %15, %cst_18 [0] : vector<2x256xf32> to vector<256xf32>
    %55 = vector.shape_cast %54 : vector<256xf32> to vector<1x256xf32>
    %cst_19 = arith.constant dense<0.000000e+00> : vector<1x256xf32>
    %56 = tpu.matmul %55, %53, %cst_19 {dimension_numbers = #tpu.dot_dimension_numbers<[1], [0], [0], [1], [0, 0, 1, 1], [], []>} : vector<1x256xf32>, vector<256x256xf32>, vector<1x256xf32> -> vector<1x256xf32>
    %cst_20 = arith.constant 6.250000e-02 : f32
    %57 = vector.broadcast %cst_20 : f32 to vector<1x256xf32>
    %58 = arith.mulf %56, %57 : vector<1x256xf32>
    %59 = vector.broadcast %58 : vector<1x256xf32> to vector<2x256xf32>
    %60 = arith.subf %15, %59 : vector<2x256xf32>
    %61 = arith.mulf %60, %60 : vector<2x256xf32>
    %cst_21 = arith.constant dense<0.000000e+00> : vector<256xf32>
    %62 = vector.multi_reduction <add>, %61, %cst_21 [0] : vector<2x256xf32> to vector<256xf32>
    %63 = vector.shape_cast %62 : vector<256xf32> to vector<1x256xf32>
    %cst_22 = arith.constant dense<0.000000e+00> : vector<1x256xf32>
    %64 = tpu.matmul %63, %53, %cst_22 {dimension_numbers = #tpu.dot_dimension_numbers<[1], [0], [0], [1], [0, 0, 1, 1], [], []>} : vector<1x256xf32>, vector<256x256xf32>, vector<1x256xf32> -> vector<1x256xf32>
    %cst_23 = arith.constant 6.250000e-02 : f32
    %65 = vector.broadcast %cst_23 : f32 to vector<1x256xf32>
    %66 = arith.mulf %64, %65 : vector<1x256xf32>
    %cst_24 = arith.constant 9.99999974E-6 : f32
    %67 = vector.broadcast %cst_24 : f32 to vector<1x256xf32>
    %68 = arith.addf %66, %67 : vector<1x256xf32>
    %69 = math.rsqrt %68 : vector<1x256xf32>
    %70 = arith.mulf %3, %69 : vector<1x256xf32>
    %71 = arith.mulf %58, %70 : vector<1x256xf32>
    %72 = arith.subf %4, %71 : vector<1x256xf32>
    %c0_25 = arith.constant 0 : index
    %c0_26 = arith.constant 0 : index
    %73 = vector.load %arg5[%c0_25, %c0_26] : memref<3x128xf32, #tpu.memory_space<vmem>>, vector<3x128xf32>
    %74 = vector.extract_strided_slice %73 {offsets = [0, 0], sizes = [1, 128], strides = [1, 1]} : vector<3x128xf32> to vector<1x128xf32>
    %75 = vector.extract_strided_slice %73 {offsets = [1, 0], sizes = [1, 128], strides = [1, 1]} : vector<3x128xf32> to vector<1x128xf32>
    %76 = vector.extract_strided_slice %73 {offsets = [2, 0], sizes = [1, 128], strides = [1, 1]} : vector<3x128xf32> to vector<1x128xf32>
    %c0_27 = arith.constant 0 : index
    %c0_28 = arith.constant 0 : index
    %77 = vector.load %arg4[%c0_27, %c0_28] : memref<256x128xbf16, #tpu.memory_space<vmem>>, vector<256x128xbf16>
    %78 = tpu.iota {dimensions = array<i32: 0>} : vector<256x256xi32>
    %79 = tpu.iota {dimensions = array<i32: 1>} : vector<256x256xi32>
    %80 = arith.cmpi eq, %78, %79 : vector<256x256xi32>
    %81 = vector.shape_cast %70 : vector<1x256xf32> to vector<1x256xf32>
    %82 = vector.broadcast %81 : vector<1x256xf32> to vector<256x256xf32>
    %cst_29 = arith.constant 0.000000e+00 : f32
    %83 = vector.broadcast %cst_29 : f32 to vector<256x256xf32>
    %84 = arith.select %80, %82, %83 : vector<256x256xi1>, vector<256x256xf32>
    %cst_30 = arith.constant dense<0.000000e+00> : vector<256xf32>
    %85 = vector.multi_reduction <add>, %84, %cst_30 [1] : vector<256x256xf32> to vector<256xf32>
    %86 = vector.shape_cast %85 : vector<256xf32> to vector<256x1xf32>
    %87 = arith.extf %77 : vector<256x128xbf16> to vector<256x128xf32>
    %88 = vector.broadcast %86 : vector<256x1xf32> to vector<256x128xf32>
    %89 = arith.mulf %87, %88 : vector<256x128xf32>
    %90 = arith.truncf %89 : vector<256x128xf32> to vector<256x128xbf16>
    %91 = arith.truncf %72 : vector<1x256xf32> to vector<1x256xbf16>
    %cst_31 = arith.constant dense<0.000000e+00> : vector<1x128xf32>
    %92 = tpu.matmul %91, %77, %cst_31 {dimension_numbers = #tpu.dot_dimension_numbers<[1], [0], [0], [1], [0, 0, 1, 1], [], []>} : vector<1x256xbf16>, vector<256x128xbf16>, vector<1x128xf32> -> vector<1x128xf32>
    %93 = arith.addf %92, %74 : vector<1x128xf32>
    %94 = arith.truncf %15 : vector<2x256xf32> to vector<2x256xbf16>
    %cst_32 = arith.constant dense<0.000000e+00> : vector<2x128xf32>
    %95 = tpu.matmul %94, %90, %cst_32 {dimension_numbers = #tpu.dot_dimension_numbers<[1], [0], [0], [1], [0, 0, 1, 1], [], []>} : vector<2x256xbf16>, vector<256x128xbf16>, vector<2x128xf32> -> vector<2x128xf32>
    %96 = vector.broadcast %93 : vector<1x128xf32> to vector<2x128xf32>
    %97 = arith.addf %95, %96 : vector<2x128xf32>
    %c1 = arith.constant 1 : index
    %98 = memref.load %arg1[%c1] : memref<2xf32, #tpu.memory_space<smem>>
    %cst_33 = arith.constant 0.000000e+00 : f32
    %99 = vector.broadcast %cst_33 : f32 to vector<2x128xf32>
    %100 = arith.cmpf oge, %97, %99 : vector<2x128xf32>
    %101 = vector.broadcast %98 : f32 to vector<2x128xf32>
    %102 = arith.mulf %101, %97 : vector<2x128xf32>
    %103 = arith.select %100, %97, %102 : vector<2x128xi1>, vector<2x128xf32>
    %104 = tpu.iota {dimensions = array<i32: 0>} : vector<128x128xi32>
    %105 = tpu.iota {dimensions = array<i32: 1>} : vector<128x128xi32>
    %c16_i32 = arith.constant 16 : i32
    %c0_i32_34 = arith.constant 0 : i32
    %106 = arith.cmpi eq, %c16_i32, %c0_i32_34 : i32
    %c1_i32_35 = arith.constant 1 : i32
    %107 = arith.select %106, %c1_i32_35, %c16_i32 : i32
    %108 = vector.broadcast %107 : i32 to vector<128x128xi32>
    %109 = arith.remsi %104, %108 : vector<128x128xi32>
    %c0_i32_36 = arith.constant 0 : i32
    %110 = vector.broadcast %c0_i32_36 : i32 to vector<128x128xi32>
    %111 = arith.cmpi ne, %109, %110 : vector<128x128xi32>
    %c0_i32_37 = arith.constant 0 : i32
    %112 = vector.broadcast %c0_i32_37 : i32 to vector<128x128xi32>
    %113 = arith.cmpi slt, %109, %112 : vector<128x128xi32>
    %c0_i32_38 = arith.constant 0 : i32
    %114 = arith.cmpi slt, %107, %c0_i32_38 : i32
    %115 = vector.broadcast %114 : i1 to vector<128x128xi1>
    %116 = vector.broadcast %115 : vector<128x128xi1> to vector<128x128xi1>
    %117 = arith.xori %113, %116 : vector<128x128xi1>
    %118 = arith.andi %117, %111 : vector<128x128xi1>
    %119 = vector.broadcast %107 : i32 to vector<128x128xi32>
    %120 = arith.addi %109, %119 : vector<128x128xi32>
    %121 = arith.select %118, %120, %109 : vector<128x128xi1>, vector<128x128xi32>
    %c16_i32_39 = arith.constant 16 : i32
    %c0_i32_40 = arith.constant 0 : i32
    %122 = arith.cmpi eq, %c16_i32_39, %c0_i32_40 : i32
    %c1_i32_41 = arith.constant 1 : i32
    %123 = arith.select %122, %c1_i32_41, %c16_i32_39 : i32
    %124 = vector.broadcast %123 : i32 to vector<128x128xi32>
    %125 = arith.remsi %105, %124 : vector<128x128xi32>
    %c0_i32_42 = arith.constant 0 : i32
    %126 = vector.broadcast %c0_i32_42 : i32 to vector<128x128xi32>
    %127 = arith.cmpi ne, %125, %126 : vector<128x128xi32>
    %c0_i32_43 = arith.constant 0 : i32
    %128 = vector.broadcast %c0_i32_43 : i32 to vector<128x128xi32>
    %129 = arith.cmpi slt, %125, %128 : vector<128x128xi32>
    %c0_i32_44 = arith.constant 0 : i32
    %130 = arith.cmpi slt, %123, %c0_i32_44 : i32
    %131 = vector.broadcast %130 : i1 to vector<128x128xi1>
    %132 = vector.broadcast %131 : vector<128x128xi1> to vector<128x128xi1>
    %133 = arith.xori %129, %132 : vector<128x128xi1>
    %134 = arith.andi %133, %127 : vector<128x128xi1>
    %135 = vector.broadcast %123 : i32 to vector<128x128xi32>
    %136 = arith.addi %125, %135 : vector<128x128xi32>
    %137 = arith.select %134, %136, %125 : vector<128x128xi1>, vector<128x128xi32>
    %138 = arith.cmpi eq, %121, %137 : vector<128x128xi32>
    %cst_45 = arith.constant 1.000000e+00 : f32
    %cst_46 = arith.constant 0.000000e+00 : f32
    %139 = vector.broadcast %cst_45 : f32 to vector<128x128xf32>
    %140 = vector.broadcast %cst_46 : f32 to vector<128x128xf32>
    %141 = arith.select %138, %139, %140 : vector<128x128xi1>, vector<128x128xf32>
    %cst_47 = arith.constant dense<0.000000e+00> : vector<128xf32>
    %142 = vector.multi_reduction <add>, %103, %cst_47 [0] : vector<2x128xf32> to vector<128xf32>
    %143 = vector.shape_cast %142 : vector<128xf32> to vector<1x128xf32>
    %cst_48 = arith.constant dense<0.000000e+00> : vector<1x128xf32>
    %144 = tpu.matmul %143, %141, %cst_48 {dimension_numbers = #tpu.dot_dimension_numbers<[1], [0], [0], [1], [0, 0, 1, 1], [], []>} : vector<1x128xf32>, vector<128x128xf32>, vector<1x128xf32> -> vector<1x128xf32>
    %cst_49 = arith.constant 6.250000e-02 : f32
    %145 = vector.broadcast %cst_49 : f32 to vector<1x128xf32>
    %146 = arith.mulf %144, %145 : vector<1x128xf32>
    %147 = vector.broadcast %146 : vector<1x128xf32> to vector<2x128xf32>
    %148 = arith.subf %103, %147 : vector<2x128xf32>
    %149 = arith.mulf %148, %148 : vector<2x128xf32>
    %cst_50 = arith.constant dense<0.000000e+00> : vector<128xf32>
    %150 = vector.multi_reduction <add>, %149, %cst_50 [0] : vector<2x128xf32> to vector<128xf32>
    %151 = vector.shape_cast %150 : vector<128xf32> to vector<1x128xf32>
    %cst_51 = arith.constant dense<0.000000e+00> : vector<1x128xf32>
    %152 = tpu.matmul %151, %141, %cst_51 {dimension_numbers = #tpu.dot_dimension_numbers<[1], [0], [0], [1], [0, 0, 1, 1], [], []>} : vector<1x128xf32>, vector<128x128xf32>, vector<1x128xf32> -> vector<1x128xf32>
    %cst_52 = arith.constant 6.250000e-02 : f32
    %153 = vector.broadcast %cst_52 : f32 to vector<1x128xf32>
    %154 = arith.mulf %152, %153 : vector<1x128xf32>
    %cst_53 = arith.constant 9.99999974E-6 : f32
    %155 = vector.broadcast %cst_53 : f32 to vector<1x128xf32>
    %156 = arith.addf %154, %155 : vector<1x128xf32>
    %157 = math.rsqrt %156 : vector<1x128xf32>
    %158 = arith.mulf %75, %157 : vector<1x128xf32>
    %159 = arith.mulf %146, %158 : vector<1x128xf32>
    %160 = arith.subf %76, %159 : vector<1x128xf32>
    %c0_54 = arith.constant 0 : index
    %c0_55 = arith.constant 0 : index
    %161 = vector.load %arg7[%c0_54, %c0_55] : memref<1x64xf32, #tpu.memory_space<vmem>>, vector<1x64xf32>
    %c0_56 = arith.constant 0 : index
    %c0_57 = arith.constant 0 : index
    %162 = vector.load %arg6[%c0_56, %c0_57] : memref<128x64xbf16, #tpu.memory_space<vmem>>, vector<128x64xbf16>
    %163 = tpu.iota {dimensions = array<i32: 0>} : vector<128x128xi32>
    %164 = tpu.iota {dimensions = array<i32: 1>} : vector<128x128xi32>
    %165 = arith.cmpi eq, %163, %164 : vector<128x128xi32>
    %166 = vector.shape_cast %158 : vector<1x128xf32> to vector<1x128xf32>
    %167 = vector.broadcast %166 : vector<1x128xf32> to vector<128x128xf32>
    %cst_58 = arith.constant 0.000000e+00 : f32
    %168 = vector.broadcast %cst_58 : f32 to vector<128x128xf32>
    %169 = arith.select %165, %167, %168 : vector<128x128xi1>, vector<128x128xf32>
    %cst_59 = arith.constant dense<0.000000e+00> : vector<128xf32>
    %170 = vector.multi_reduction <add>, %169, %cst_59 [1] : vector<128x128xf32> to vector<128xf32>
    %171 = vector.shape_cast %170 : vector<128xf32> to vector<128x1xf32>
    %172 = arith.extf %162 : vector<128x64xbf16> to vector<128x64xf32>
    %173 = vector.broadcast %171 : vector<128x1xf32> to vector<128x64xf32>
    %174 = arith.mulf %172, %173 : vector<128x64xf32>
    %175 = arith.truncf %174 : vector<128x64xf32> to vector<128x64xbf16>
    %176 = arith.truncf %160 : vector<1x128xf32> to vector<1x128xbf16>
    %cst_60 = arith.constant dense<0.000000e+00> : vector<1x64xf32>
    %177 = tpu.matmul %176, %162, %cst_60 {dimension_numbers = #tpu.dot_dimension_numbers<[1], [0], [0], [1], [0, 0, 1, 1], [], []>} : vector<1x128xbf16>, vector<128x64xbf16>, vector<1x64xf32> -> vector<1x64xf32>
    %178 = arith.addf %177, %161 : vector<1x64xf32>
    %179 = arith.truncf %103 : vector<2x128xf32> to vector<2x128xbf16>
    %cst_61 = arith.constant dense<0.000000e+00> : vector<2x64xf32>
    %180 = tpu.matmul %179, %175, %cst_61 {dimension_numbers = #tpu.dot_dimension_numbers<[1], [0], [0], [1], [0, 0, 1, 1], [], []>} : vector<2x128xbf16>, vector<128x64xbf16>, vector<2x64xf32> -> vector<2x64xf32>
    %181 = vector.broadcast %178 : vector<1x64xf32> to vector<2x64xf32>
    %182 = arith.addf %180, %181 : vector<2x64xf32>
    %c0_62 = arith.constant 0 : index
    %c0_63 = arith.constant 0 : index
    %183 = vector.load %arg8[%c0_62, %c0_63] : memref<2x64xf32, #tpu.memory_space<vmem>>, vector<2x64xf32>
    tpu.vector_store %arg8[%c0_62, %c0_63], %182 {strides = array<i32>} : memref<2x64xf32, #tpu.memory_space<vmem>>, vector<2x64xf32>,
    return
  }
}

</mosaic_0001>

<bundles_post_ra>
// kernel: tpu_custom_call.1
= control target key start
LH: loop header
LB: loop body
LE: loop exit
PB: predicated region body
PF: predicated region fallthrough
CT: control target
= control target key end

     0   :  { %13 = vsyncpa [#allocation5], 0  ;;  %s3841_s0 = inlined_call_operand.vmem [shape: f32[2,128], index: 0, kind: input, shape index: {}]   ;;  %s3842_s1 = inlined_call_operand.vmem [shape: f32[2], index: 1, kind: input, shape index: {}]   ;;  %s3843_s2 = inlined_call_operand.hbm [shape: bf16[128,256], index: 2, kind: input, shape index: {}]   ;;  %s3844_s3 = inlined_call_operand.vmem [shape: f32[3,256], index: 3, kind: input, shape index: {}]   ;;  %s3845_s4 = inlined_call_operand.hbm [shape: bf16[256,128], index: 4, kind: input, shape index: {}]   ;;  %s3846_s5 = inlined_call_operand.vmem [shape: f32[3,128], index: 5, kind: input, shape index: {}]   ;;  %s3847_s6 = inlined_call_operand.vmem [shape: bf16[128,64], index: 6, kind: input, shape index: {}]   ;;  %s3848_s7 = inlined_call_operand.vmem [shape: f32[1,64], index: 7, kind: input, shape index: {}]   ;;  %s3849_s8 = inlined_call_operand.hbm [shape: f32[2,64], index: 8, kind: output, shape index: {}]  }
   0x1   :  { %14 = vsyncpa [#allocation3], 0 }
   0x2   :  { %15 = vsyncpa [#allocation8], 0 }
   0x3   :  { %16 = vsyncpa [#allocation4], 0  ;;  %s24_s29 = sshll.u32 %s3842_s1, 4  ;;  %s32_s10 = sshll.u32 %s3843_s2, 4  ;;  %s25_s29 = int_to_ptr.vmem [resolvable:$true] %s24_s29  ;;  %s33_s10 = int_to_ptr.hbm [resolvable:$true] %s32_s10 }
   0x4   :  { %s2531_s11 = smov [#allocation2]   ;;  %s2532_s12 = smov [#allocation6]  }
   0x5   :  { %27 = dma.vmem_to_smem %s25_s29, 16, %s2531_s11, [#allocation5]  }
   0x6   :  { %s34_s13 = sshll.u32 %s2532_s12, 4  ;;  %s2533_s14 = smov 128   ;;  %s35_s13 = int_to_ptr.vmem [resolvable:$true] %s34_s13 }
   0x7   :  { %s2534_s15 = smov 8   ;;  %s47_s18 = sshll.u32 %s3845_s4, 4  ;;  %s48_s18 = int_to_ptr.hbm [resolvable:$true] %s47_s18 }
   0x8   :  { %40 = dma.hbm_to_vmem [thread:$0]  %s33_s10, 2048, %s35_s13, [#allocation3], %s2533_s14, %s2533_s14, %s2534_s15  }
   0x9   :  { %s2535_s1 = smov [#allocation7]   ;;  %s2536_s20 = smov 64  }
   0xa   :  { %s49_s19 = sshll.u32 %s2535_s1, 4  ;;  %s2537_s21 = smov 4   ;;  %s50_s19 = int_to_ptr.vmem [resolvable:$true] %s49_s19 }
   0xb   :  { %55 = dma.hbm_to_vmem [thread:$0]  %s48_s18, 2048, %s50_s19, [#allocation8], %s2536_s20, %s2536_s20, %s2537_s21  }
   0xc   :  { %2523 = dma.done.wait [#allocation5], 16  }
   0xd   :  { %2524 = vsyncadd [#allocation5], 4294967280 }
   0xe   :  { %2525 = dma.done.wait [#allocation3], 2048  }
   0xf   :  { %2526 = vsyncadd [#allocation3], 4294965248 }
  0x10   :  { %2527 = dma.done.wait [#allocation8], 2048  }
  0x11   :  { %2528 = vsyncadd [#allocation8], 4294965248 }
  0x12   :  { %74 = sfence }
  0x13   :  { %v2121_v0 = vld [vmem:[#allocation6 + $0x70] sm:$0xf]  ;;  %v2399_v1 = vld [vmem:[#allocation6 + $0x74] sm:$0xf0]  ;;  %v2398_v2 = vld [vmem:[#allocation6 + $0x74] sm:$0xf]  ;;  %v215_v19 = vlaneseq }
  0x14   :  { %v2122_v3 = vor.u32 %v2399_v1, %v2121_v0  ;;  %v2123_v4 = vld [vmem:[#allocation6 + $0x78] sm:$0xf0]  ;;  %v2113_v5 = vld [vmem:[#allocation6 + $0x60] sm:$0xf]  ;;  %v2397_v6 = vld [vmem:[#allocation6 + $0x64] sm:$0xf0] }
  0x15   :  { %v2126_v7 = vor.u32 %v2398_v2, %v2123_v4  ;;  %v2396_v8 = vld [vmem:[#allocation6 + $0x64] sm:$0xf]  ;;  %v2115_v9 = vld [vmem:[#allocation6 + $0x68] sm:$0xf0]  ;;  %v2114_v10 = vor.u32 %v2397_v6, %v2113_v5  ;;  %v2105_v12 = vld [vmem:[#allocation6 + $0x50] sm:$0xf] }
  0x16   :  { %181 = vmatpush.bf16.msra.mxu2 %v2122_v3  ;;  %v2118_v11 = vor.u32 %v2396_v8, %v2115_v9  ;;  %v2395_v13 = vld [vmem:[#allocation6 + $0x54] sm:$0xf0]  ;;  %v2394_v14 = vld [vmem:[#allocation6 + $0x54] sm:$0xf]  ;;  %v2107_v15 = vld [vmem:[#allocation6 + $0x58] sm:$0xf0] }
  0x17   :  { %194 = vmatpush.bf16.msra.mxu3 %v2126_v7  ;;  %v2106_v16 = vor.u32 %v2395_v13, %v2105_v12  ;;  %v2097_v17 = vld [vmem:[#allocation6 + $0x40] sm:$0xf]  ;;  %v2393_v18 = vld [vmem:[#allocation6 + $0x44] sm:$0xf0]  ;;  %v2110_v20 = vor.u32 %v2394_v14, %v2107_v15  ;;  %v2392_v21 = vld [vmem:[#allocation6 + $0x44] sm:$0xf] }
  0x18   :  { %v2099_v22 = vld [vmem:[#allocation6 + $0x48] sm:$0xf0]  ;;  %v2089_v23 = vld [vmem:[#allocation6 + $0x30] sm:$0xf]  ;;  %v2391_v24 = vld [vmem:[#allocation6 + $0x34] sm:$0xf0]  ;;  %v2098_v27 = vor.u32 %v2393_v18, %v2097_v17 }
  0x19   :  { %v2390_v25 = vld [vmem:[#allocation6 + $0x34] sm:$0xf]  ;;  %v2091_v26 = vld [vmem:[#allocation6 + $0x38] sm:$0xf0]  ;;  %v2594_v28 = vshrl.u32 %v215_v19, 7  ;;  %v2596_v29 = vand.u32 127, %v215_v19  ;;  %v2102_v30 = vor.u32 %v2392_v21, %v2099_v22  ;;  %v2090_v31 = vor.u32 %v2391_v24, %v2089_v23 }
  0x1a   :  { %182 = vmatpush.bf16.msra.mxu2 %v2114_v10  ;;  %v2094_v32 = vor.u32 %v2390_v25, %v2091_v26  ;;  %v2081_v40 = vld [vmem:[#allocation6 + $0x20] sm:$0xf]  ;;  %v2389_v45 = vld [vmem:[#allocation6 + $0x24] sm:$0xf0]  ;;  %v2388_v50 = vld [vmem:[#allocation6 + $0x24] sm:$0xf] }
  0x1b   :  { %195 = vmatpush.bf16.msra.mxu3 %v2118_v11  ;;  %3964 = vst [vmem:[#allocation14_spill] sm:$0xff] %v2594_v28  ;;  %v2599_v33 = vadd.s32 120, %v2594_v28  ;;  %v2602_v34 = vadd.s32 248, %v2594_v28  ;;  %v2605_v35 = vadd.s32 128, %v2596_v29  ;;  %v2608_v36 = vadd.s32 112, %v2594_v28  ;;  %s3283_s23 = sld [smem:[#allocation2]] }
  0x1c   :  { %3965 = vst [vmem:[#allocation15_spill] sm:$0xff] %v2596_v29  ;;  %v2611_v37 = vadd.s32 240, %v2594_v28  ;;  %v2614_v38 = vadd.s32 104, %v2594_v28  ;;  %v2617_v39 = vadd.s32 232, %v2594_v28  ;;  %v2625_v44 = vadd.s32 96, %v2594_v28  ;;  %s2051_s12 = sshll.u32 %s3849_s8, 4  ;;  %s2052_s12 = int_to_ptr.hbm [resolvable:$true] %s2051_s12 }
  0x1d   :  { %3966 = vst [vmem:[#allocation16_spill] sm:$0xff] %v2599_v33  ;;  %v360_v41 = vand.u32 31, %v2599_v33  ;;  %v472_v42 = vand.u32 31, %v2602_v34  ;;  %v2622_v43 = vand.u32 31, %v2605_v35  ;;  %v353_v46 = vand.u32 31, %v2608_v36 }
  0x1e   :  { %183 = vmatpush.bf16.msra.mxu2 %v2106_v16  ;;  %3967 = vst [vmem:[#allocation17_spill] sm:$0xff] %v2602_v34  ;;  %v465_v47 = vand.u32 31, %v2611_v37  ;;  %v346_v48 = vand.u32 31, %v2614_v38  ;;  %v458_v49 = vand.u32 31, %v2617_v39  ;;  %v2083_v51 = vld [vmem:[#allocation6 + $0x28] sm:$0xf0]  ;;  %v2082_v57 = vor.u32 %v2389_v45, %v2081_v40 }
  0x1f   :  { %196 = vmatpush.bf16.msra.mxu3 %v2110_v20  ;;  %3968 = vst [vmem:[#allocation18_spill] sm:$0xff] %v2605_v35  ;;  %vm2634_vm0 = vcmp.eq.s32.totalorder %v360_v41, %v2622_v43  ;;  %vm2641_vm1 = vcmp.eq.s32.totalorder %v472_v42, %v2622_v43  ;;  %v3872_v54 = vmov 1.0   ;;  %vm2654_vm2 = vcmp.eq.s32.totalorder %v353_v46, %v2622_v43  ;;  %v2073_v58 = vld [vmem:[#allocation6 + $0x10] sm:$0xf]  ;;  %v2387_v59 = vld [vmem:[#allocation6 + $0x14] sm:$0xf0] }
  0x20   :  { %3969 = vst [vmem:[#allocation19_spill] sm:$0xff] %v2608_v36  ;;  %2159 = vmatpush.msk.msra.mxu0 %vm2634_vm0, %v3872_v54  ;;  %2175 = vmatpush.msk.msra.mxu1 %vm2641_vm1, %v3872_v54  ;;  %v339_v56 = vand.u32 31, %v2625_v44  ;;  %vm2662_vm3 = vcmp.eq.s32.totalorder %v465_v47, %v2622_v43  ;;  %vm2669_vm4 = vcmp.eq.s32.totalorder %v346_v48, %v2622_v43  ;;  %v3982_v61 = vmov 0  ;;  %v2386_v63 = vld [vmem:[#allocation6 + $0x14] sm:$0xf] }
  0x21   :  { %3970 = vst [vmem:[#allocation20_spill] sm:$0xff] %v2611_v37  ;;  %v3983_v61 = vsel %vm2669_vm4, 4294967295, %v3982_v61  ;;  %v2086_v62 = vor.u32 %v2388_v50, %v2083_v51  ;;  %vm2679_vm5 = vcmp.eq.s32.totalorder %v458_v49, %v2622_v43  ;;  %v3984_v0 = vmov 0  ;;  %v2075_v3 = vld [vmem:[#allocation6 + $0x18] sm:$0xf0] }
  0x22   :  { %3971 = vst [vmem:[#allocation21_spill] sm:$0xff] %v2614_v38  ;;  %184 = vmatpush.bf16.msra.mxu2 %v2098_v27  ;;  %2160 = vmatpush.msk.msra.mxu0 %vm2654_vm2, %v3872_v54  ;;  %v3985_v0 = vsel %vm2679_vm5, 4294967295, %v3984_v0  ;;  %v2684_v1 = vadd.s32 224, %v2594_v28  ;;  %vm2689_vm6 = vcmp.eq.s32.totalorder %v339_v56, %v2622_v43  ;;  %v3987_v2 = vmov 0  ;;  %v2065_v15 = vld [vmem:[#allocation6] sm:$0xf] }
  0x23   :  { %3972 = vst [vmem:[#allocation22_spill] sm:$0xff] %v2617_v39  ;;  %197 = vmatpush.bf16.msra.mxu3 %v2102_v30  ;;  %v3988_v2 = vsel %vm2689_vm6, 4294967295, %v3987_v2  ;;  %2176 = vmatpush.msk.msra.mxu1 %vm2662_vm3, %v3872_v54  ;;  %v2697_v4 = vadd.s32 88, %v2594_v28  ;;  %v2700_v5 = vadd.s32 216, %v2594_v28  ;;  %v2703_v6 = vadd.s32 80, %v2594_v28 }
  0x24   :  { %3973 = vst [vmem:[#allocation23_spill] sm:$0xff] %v2625_v44  ;;  %v2706_v7 = vadd.s32 208, %v2594_v28  ;;  %v2074_v8 = vor.u32 %v2387_v59, %v2073_v58  ;;  %2161 = vmatpush.msk.msra.mxu0 %vm2669_vm4, %v3872_v54  ;;  %v451_v9 = vand.u32 31, %v2684_v1  ;;  %v2078_v14 = vor.u32 %v2386_v63, %v2075_v3  ;;  %v2385_v16 = vld [vmem:[#allocation6 + $0x4] sm:$0xf0] }
  0x25   :  { %3986 = vst [vmem:[#allocation24_spill] sm:$0xff] %v2684_v1  ;;  %2177 = vmatpush.msk.msra.mxu1 %vm2679_vm5, %v3872_v54  ;;  %v332_v10 = vand.u32 31, %v2697_v4  ;;  %v444_v11 = vand.u32 31, %v2700_v5  ;;  %v325_v12 = vand.u32 31, %v2703_v6  ;;  %v3993_v17 = vmov 0 }
  0x26   :  { %185 = vmatpush.bf16.msra.mxu2 %v2090_v31  ;;  %3989 = vst [vmem:[#allocation25_spill] sm:$0xff] %v2697_v4  ;;  %v437_v13 = vand.u32 31, %v2706_v7  ;;  %2162 = vmatpush.msk.msra.mxu0 %vm2689_vm6, %v3872_v54  ;;  %vm2723_vm7 = vcmp.eq.s32.totalorder %v451_v9, %v2622_v43  ;;  %v2384_v18 = vld [vmem:[#allocation6 + $0x4] sm:$0xf]  ;;  %v2067_v19 = vld [vmem:[#allocation6 + $0x8] sm:$0xf0]  ;;  %v2066_v25 = vor.u32 %v2385_v16, %v2065_v15  ;;  %v210_v60 = vstv %s3283_s23 }
  0x27   :  { %198 = vmatpush.bf16.msra.mxu3 %v2094_v32  ;;  %3990 = vst [vmem:[#allocation26_spill] sm:$0xff] %v2700_v5  ;;  %v3994_v17 = vsel %vm2723_vm7, 4294967295, %v3993_v17  ;;  %v2728_v20 = vand.u32 31, %v2596_v29  ;;  %2178 = vmatpush.msk.msra.mxu1 %vm2723_vm7, %v3872_v54  ;;  %vm2734_vm8 = vcmp.eq.s32.totalorder %v332_v10, %v2622_v43  ;;  %v3995_v21 = vmov 0  ;;  %v75_v26 = vld [vmem:[%s3841_s0] sm:$0x3] }
  0x28   :  { %3991 = vst [vmem:[#allocation27_spill] sm:$0xff] %v2703_v6  ;;  %v3996_v21 = vsel %vm2734_vm8, 4294967295, %v3995_v21  ;;  %vm2739_vm9 = vcmp.eq.s32.totalorder %v444_v11, %v2622_v43  ;;  %v3997_v22 = vmov 0  ;;  %2163 = vmatpush.msk.msra.mxu0 %vm2734_vm8, %v3872_v54  ;;  %vm2747_vm10 = vcmp.eq.s32.totalorder %v325_v12, %v2622_v43 }
  0x29   :  { %3992 = vst [vmem:[#allocation28_spill] sm:$0xff] %v2706_v7  ;;  %v3998_v22 = vsel %vm2739_vm9, 4294967295, %v3997_v22  ;;  %v3999_v23 = vmov 0  ;;  %vm2752_vm11 = vcmp.eq.s32.totalorder %v437_v13, %v2622_v43  ;;  %v4001_v24 = vmov 0  ;;  %2179 = vmatpush.msk.msra.mxu1 %vm2739_vm9, %v3872_v54 }
  0x2a   :  { %186 = vmatpush.bf16.msra.mxu2 %v2082_v57  ;;  %v4000_v23 = vsel %vm2747_vm10, 4294967295, %v3999_v23  ;;  %v4002_v24 = vsel %vm2752_vm11, 4294967295, %v4001_v24  ;;  %v2070_v27 = vor.u32 %v2384_v18, %v2067_v19  ;;  %2164 = vmatpush.msk.msra.mxu0 %vm2747_vm10, %v3872_v54  ;;  %vm2768_vm12 = vcmp.eq.s32.totalorder %v360_v41, %v2728_v20 }
  0x2b   :  { %199 = vmatpush.bf16.msra.mxu3 %v2086_v62  ;;  %2180 = vmatpush.msk.msra.mxu1 %vm2752_vm11, %v3872_v54  ;;  %v93_v31 = vpack.c.bf16 %v75_v26, %v75_v26  ;;  %vm2778_vm13 = vcmp.eq.s32.totalorder %v472_v42, %v2728_v20  ;;  %vm2788_vm14 = vcmp.eq.s32.totalorder %v353_v46, %v2728_v20  ;;  %v4011_v42 = vmov 0 }
  0x2c   :  { %vm2798_vm15 = vcmp.eq.s32.totalorder %v465_v47, %v2728_v20  ;;  %vm2805_vm10 = vcmp.eq.s32.totalorder %v346_v48, %v2728_v20  ;;  %vm2815_vm11 = vcmp.eq.s32.totalorder %v458_v49, %v2728_v20  ;;  %vm2825_vm8 = vcmp.eq.s32.totalorder %v339_v56, %v2728_v20 }
  0x2d   :  { %v4012_v42 = vsel %vm2805_vm10, 4294967295, %v4011_v42  ;;  %v4015_v46 = vmov 0  ;;  %vm2833_vm9 = vcmp.eq.s32.totalorder %v451_v9, %v2728_v20  ;;  %v4017_v47 = vmov 0 }
  0x2e   :  { %187 = vmatpush.bf16.msra.mxu2 %v2074_v8  ;;  %v4016_v46 = vsel %vm2825_vm8, 4294967295, %v4015_v46  ;;  %v4018_v47 = vsel %vm2833_vm9, 4294967295, %v4017_v47  ;;  %vm2841_vm6 = vcmp.eq.s32.totalorder %v332_v10, %v2728_v20  ;;  %v4019_v48 = vmov 0 }
  0x2f   :  { %200 = vmatpush.bf16.msra.mxu3 %v2078_v14  ;;  %v4020_v48 = vsel %vm2841_vm6, 4294967295, %v4019_v48  ;;  %vm2849_vm7 = vcmp.eq.s32.totalorder %v444_v11, %v2728_v20  ;;  %v4021_v49 = vmov 0  ;;  %vm2857_vm4 = vcmp.eq.s32.totalorder %v325_v12, %v2728_v20 }
  0x30   :  { %v4022_v49 = vsel %vm2849_vm7, 4294967295, %v4021_v49  ;;  %v4023_v50 = vmov 0  ;;  %v4025_v51 = vmov 0  ;;  %v2879_v56 = vadd.s32 72, %v2594_v28 }
  0x31   :  { %v4024_v50 = vsel %vm2857_vm4, 4294967295, %v4023_v50  ;;  %v2882_v57 = vadd.s32 200, %v2594_v28  ;;  %v2887_v62 = vadd.s32 64, %v2594_v28  ;;  %v2890_v63 = vadd.s32 192, %v2594_v28 }
  0x32   :  { %188 = vmatpush.bf16.msra.mxu2 %v2066_v25  ;;  %4027 = vst [vmem:[#allocation29_spill] sm:$0xff] %v2879_v56  ;;  %v318_v58 = vand.u32 31, %v2879_v56  ;;  %v4031_v3 = vmov 0  ;;  %v4033_v8 = vmov 0  ;;  %v4035_v9 = vmov 0 }
  0x33   :  { %201 = vmatpush.bf16.msra.mxu3 %v2070_v27  ;;  %4028 = vst [vmem:[#allocation30_spill] sm:$0xff] %v2882_v57  ;;  %v430_v59 = vand.u32 31, %v2882_v57  ;;  %v4037_v10 = vmov 0  ;;  %v311_v11 = vand.u32 31, %v2887_v62  ;;  %v423_v12 = vand.u32 31, %v2890_v63 }
  0x34   :  { %4029 = vst [vmem:[#allocation31_spill] sm:$0xff] %v2887_v62  ;;  %v2930_v14 = vadd.s32 184, %v2594_v28  ;;  %v2933_v15 = vadd.s32 48, %v2594_v28  ;;  %v2936_v16 = vadd.s32 176, %v2594_v28  ;;  %v4043_v18 = vmov 0 }
  0x35   :  { %189 = vmatmul.bf16.vlgmr.msra.gmra.mxu2 %v93_v31  ;;  %4030 = vst [vmem:[#allocation32_spill] sm:$0xff] %v2890_v63  ;;  %v4045_v19 = vmov 0  ;;  %v4047_v25 = vmov 0  ;;  %v4049_v26 = vmov 0  ;;  %v4062_v57 = vmov 0 }
  0x36   :  { %2127 = vmatpush.msk.msrb.mxu2 %vm2768_vm12, %v3872_v54  ;;  %202 = vmatmul.bf16.vlgmr.msra.gmra.mxu3 %v93_v31  ;;  %4040 = vst [vmem:[#allocation34_spill] sm:$0xff] %v2930_v14  ;;  %v416_v31 = vand.u32 31, %v2930_v14  ;;  %v4053_v14 = vmov 0  ;;  %v4068_v62 = vmov 0  ;;  %v3035_v56 = vadd.s32 32, %v2594_v28 }
  0x37   :  { %2143 = vmatpush.msk.msrb.mxu3 %vm2778_vm13, %v3872_v54  ;;  %4041 = vst [vmem:[#allocation35_spill] sm:$0xff] %v2933_v15  ;;  %v3057_v5 = vadd.s32 24, %v2594_v28  ;;  %v3060_v4 = vadd.s32 152, %v2594_v28  ;;  %v4080_v7 = vmov 0  ;;  %v3092_v33 = vadd.s32 144, %v2594_v28 }
  0x38   :  { %2128 = vmatpush.msk.msrb.mxu2 %vm2788_vm14, %v3872_v54  ;;  %4042 = vst [vmem:[#allocation36_spill] sm:$0xff] %v2936_v16  ;;  %v283_v6 = vand.u32 31, %v3035_v56  ;;  %v4091_v34 = vmov 0  ;;  %v4096_v44 = vmov 0  ;;  %v4101_v29 = vmov 0 }
  0x39   :  { %2144 = vmatpush.msk.msrb.mxu3 %vm2798_vm15, %v3872_v54  ;;  %4070 = vst [vmem:[#allocation39_spill] sm:$0xff] %v3035_v56  ;;  %v276_v39 = vand.u32 31, %v3057_v5  ;;  %v388_v38 = vand.u32 31, %v3060_v4  ;;  %v3116_v56 = vadd.s32 8, %v2594_v28  ;;  %v4111_v35 = vmov 0 }
  0x3a   :  { %2129 = vmatpush.msk.msrb.mxu2 %vm2805_vm10, %v3872_v54  ;;  %4076 = vst [vmem:[#allocation41_spill] sm:$0xff] %v3057_v5  ;;  %v4088_v5 = vmov 0 }
  0x3b   :  { %2145 = vmatpush.msk.msrb.mxu3 %vm2815_vm11, %v3872_v54  ;;  %4077 = vst [vmem:[#allocation42_spill] sm:$0xff] %v3060_v4  ;;  %v4086_v4 = vmov 0  ;;  %v262_v37 = vand.u32 31, %v3116_v56 }
  0x3c   :  { %2130 = vmatpush.msk.msrb.mxu2 %vm2825_vm8, %v3872_v54  ;;  %vm2865_vm8 = vcmp.eq.s32.totalorder %v437_v13, %v2728_v20  ;;  %v2921_v13 = vadd.s32 56, %v2594_v28  ;;  %4083 = vst [vmem:[#allocation44_spill] sm:$0xff] %v3092_v33 }
  0x3d   :  { %2146 = vmatpush.msk.msrb.mxu3 %vm2833_vm9, %v3872_v54  ;;  %v4026_v51 = vsel %vm2865_vm8, 4294967295, %v4025_v51  ;;  %4090 = vst [vmem:[#allocation45_spill] sm:$0xff] %v3116_v56  ;;  %v3175_v56 = vadd.s32 136, %v2594_v28 }
  0x3e   :  { %2131 = vmatpush.msk.msrb.mxu2 %vm2841_vm6, %v3872_v54  ;;  %vm2903_vm6 = vcmp.eq.s32.totalorder %v318_v58, %v2622_v43  ;;  %4039 = vst [vmem:[#allocation33_spill] sm:$0xff] %v2921_v13  ;;  %v304_v27 = vand.u32 31, %v2921_v13  ;;  %v4055_v13 = vmov 0 }
  0x3f   :  { %2147 = vmatpush.msk.msrb.mxu3 %vm2849_vm7, %v3872_v54  ;;  %v4036_v9 = vsel %vm2903_vm6, 4294967295, %v4035_v9  ;;  %vm2914_vm7 = vcmp.eq.s32.totalorder %v430_v59, %v2622_v43  ;;  %2165 = vmatpush.msk.msra.mxu0 %vm2903_vm6, %v3872_v54  ;;  %vm2944_vm6 = vcmp.eq.s32.totalorder %v423_v12, %v2728_v20  ;;  %4110 = vst [vmem:[#allocation51_spill] sm:$0xff] %v3175_v56 }
  0x40   :  { %2132 = vmatpush.msk.msrb.mxu2 %vm2857_vm4, %v3872_v54  ;;  %vm2893_vm4 = vcmp.eq.s32.totalorder %v318_v58, %v2728_v20  ;;  %v4038_v10 = vsel %vm2914_vm7, 4294967295, %v4037_v10  ;;  %2181 = vmatpush.msk.msra.mxu1 %vm2914_vm7, %v3872_v54  ;;  %v4046_v19 = vsel %vm2944_vm6, 4294967295, %v4045_v19  ;;  %vm2949_vm7 = vcmp.eq.s32.totalorder %v311_v11, %v2622_v43 }
  0x41   :  { %2148 = vmatpush.msk.msrb.mxu3 %vm2865_vm8, %v3872_v54  ;;  %v4032_v3 = vsel %vm2893_vm4, 4294967295, %v4031_v3  ;;  %vm2898_vm8 = vcmp.eq.s32.totalorder %v430_v59, %v2728_v20  ;;  %v4048_v25 = vsel %vm2949_vm7, 4294967295, %v4047_v25  ;;  %v297_v58 = vand.u32 31, %v2933_v15  ;;  %2166 = vmatpush.msk.msra.mxu0 %vm2949_vm7, %v3872_v54 }
  0x42   :  { %v4034_v8 = vsel %vm2898_vm8, 4294967295, %v4033_v8  ;;  %2133 = vmatpush.msk.msrb.mxu2 %vm2893_vm4, %v3872_v54  ;;  %vm2939_vm4 = vcmp.eq.s32.totalorder %v311_v11, %v2728_v20  ;;  %v409_v59 = vand.u32 31, %v2936_v16  ;;  %v2975_v11 = vadd.s32 40, %v2594_v28 }
  0x43   :  { %2149 = vmatpush.msk.msrb.mxu3 %vm2898_vm8, %v3872_v54  ;;  %v4044_v18 = vsel %vm2939_vm4, 4294967295, %v4043_v18  ;;  %vm2960_vm8 = vcmp.eq.s32.totalorder %v423_v12, %v2622_v43  ;;  %v2978_v12 = vadd.s32 168, %v2594_v28  ;;  %vm2991_vm7 = vcmp.eq.s32.totalorder %v304_v27, %v2622_v43 }
  0x44   :  { %2134 = vmatpush.msk.msrb.mxu2 %vm2939_vm4, %v3872_v54  ;;  %v4050_v26 = vsel %vm2960_vm8, 4294967295, %v4049_v26  ;;  %2182 = vmatpush.msk.msra.mxu1 %vm2960_vm8, %v3872_v54  ;;  %4051 = vst [vmem:[#allocation37_spill] sm:$0xff] %v2975_v11  ;;  %vm2981_vm4 = vcmp.eq.s32.totalorder %v304_v27, %v2728_v20  ;;  %vm2996_vm8 = vcmp.eq.s32.totalorder %v416_v31, %v2622_v43  ;;  %v4059_v16 = vmov 0 }
  0x45   :  { %2150 = vmatpush.msk.msrb.mxu3 %vm2944_vm6, %v3872_v54  ;;  %4052 = vst [vmem:[#allocation38_spill] sm:$0xff] %v2978_v12  ;;  %v4054_v14 = vsel %vm2981_vm4, 4294967295, %v4053_v14  ;;  %vm2986_vm6 = vcmp.eq.s32.totalorder %v416_v31, %v2728_v20  ;;  %v4057_v54 = vmov 0  ;;  %v4060_v16 = vsel %vm2996_vm8, 4294967295, %v4059_v16 }
  0x46   :  { %v4056_v13 = vsel %vm2986_vm6, 4294967295, %v4055_v13  ;;  %v4058_v54 = vsel %vm2991_vm7, 4294967295, %v4057_v54  ;;  %v4061_v15 = vmov 1.0   ;;  %vm3007_vm9 = vcmp.eq.s32.totalorder %v297_v58, %v2728_v20 }
  0x47   :  { %2135 = vmatpush.msk.msrb.mxu2 %vm2981_vm4, %v4061_v15  ;;  %2151 = vmatpush.msk.msrb.mxu3 %vm2986_vm6, %v4061_v15  ;;  %v4063_v57 = vsel %vm3007_vm9, 4294967295, %v4062_v57  ;;  %vm3012_vm10 = vcmp.eq.s32.totalorder %v409_v59, %v2728_v20  ;;  %v4064_v27 = vmov 0  ;;  %vm3017_vm5 = vcmp.eq.s32.totalorder %v297_v58, %v2622_v43 }
  0x48   :  { %v4065_v27 = vsel %vm3012_vm10, 4294967295, %v4064_v27  ;;  %v4066_v31 = vmov 0  ;;  %v290_v63 = vand.u32 31, %v2975_v11  ;;  %2167 = vmatpush.msk.msra.mxu0 %vm2991_vm7, %v4061_v15  ;;  %2183 = vmatpush.msk.msra.mxu1 %vm2996_vm8, %v4061_v15  ;;  %vm3029_vm4 = vcmp.eq.s32.totalorder %v409_v59, %v2622_v43 }
  0x49   :  { %v4067_v31 = vsel %vm3017_vm5, 4294967295, %v4066_v31  ;;  %v4069_v62 = vsel %vm3029_vm4, 4294967295, %v4068_v62  ;;  %v402_v58 = vand.u32 31, %v2978_v12  ;;  %v3038_v11 = vadd.s32 160, %v2594_v28  ;;  %2136 = vmatpush.msk.msrb.mxu2 %vm3007_vm9, %v4061_v15  ;;  %2152 = vmatpush.msk.msrb.mxu3 %vm3012_vm10, %v4061_v15 }
  0x4a   :  { %vm3047_vm7 = vcmp.eq.s32.totalorder %v290_v63, %v2728_v20  ;;  %v4072_v59 = vmov 0  ;;  %vm3052_vm8 = vcmp.eq.s32.totalorder %v290_v63, %v2622_v43  ;;  %v4074_v12 = vmov 0  ;;  %2168 = vmatpush.msk.msra.mxu0 %vm3017_vm5, %v4061_v15  ;;  %2184 = vmatpush.msk.msra.mxu1 %vm3029_vm4, %v4061_v15 }
  0x4b   :  { %4071 = vst [vmem:[#allocation40_spill] sm:$0xff] %v3038_v11  ;;  %v4073_v59 = vsel %vm3047_vm7, 4294967295, %v4072_v59  ;;  %v4075_v12 = vsel %vm3052_vm8, 4294967295, %v4074_v12  ;;  %vm3069_vm9 = vcmp.eq.s32.totalorder %v402_v58, %v2728_v20  ;;  %v4078_v63 = vmov 0  ;;  %2137 = vmatpush.msk.msrb.mxu2 %vm3047_vm7, %v4061_v15 }
  0x4c   :  { %v4079_v63 = vsel %vm3069_vm9, 4294967295, %v4078_v63  ;;  %vm3074_vm10 = vcmp.eq.s32.totalorder %v402_v58, %v2622_v43  ;;  %v395_v1 = vand.u32 31, %v3038_v11  ;;  %2153 = vmatpush.msk.msrb.mxu3 %vm3069_vm9, %v4061_v15  ;;  %v3089_v58 = vadd.s32 16, %v2594_v28  ;;  %2169 = vmatpush.msk.msra.mxu0 %vm3052_vm8, %v4061_v15 }
  0x4d   :  { %v4081_v7 = vsel %vm3074_vm10, 4294967295, %v4080_v7  ;;  %2185 = vmatpush.msk.msra.mxu1 %vm3074_vm10, %v4061_v15  ;;  %vm3101_vm7 = vcmp.eq.s32.totalorder %v283_v6, %v2728_v20  ;;  %v4084_v11 = vmov 0  ;;  %vm3111_vm9 = vcmp.eq.s32.totalorder %v283_v6, %v2622_v43 }
  0x4e   :  { %4082 = vst [vmem:[#allocation43_spill] sm:$0xff] %v3089_v58  ;;  %v4085_v11 = vsel %vm3101_vm7, 4294967295, %v4084_v11  ;;  %vm3106_vm5 = vcmp.eq.s32.totalorder %v395_v1, %v2728_v20  ;;  %v4089_v5 = vsel %vm3111_vm9, 4294967295, %v4088_v5  ;;  %2138 = vmatpush.msk.msrb.mxu2 %vm3101_vm7, %v4061_v15  ;;  %vm3125_vm8 = vcmp.eq.s32.totalorder %v395_v1, %v2622_v43  ;;  %2170 = vmatpush.msk.msra.mxu0 %vm3111_vm9, %v4061_v15 }
  0x4f   :  { %v4087_v4 = vsel %vm3106_vm5, 4294967295, %v4086_v4  ;;  %2154 = vmatpush.msk.msrb.mxu3 %vm3106_vm5, %v4061_v15  ;;  %v4092_v34 = vsel %vm3125_vm8, 4294967295, %v4091_v34  ;;  %vm3130_vm10 = vcmp.eq.s32.totalorder %v276_v39, %v2728_v20  ;;  %v4093_v6 = vmov 0  ;;  %2186 = vmatpush.msk.msra.mxu1 %vm3125_vm8, %v4061_v15 }
  0x50   :  { %v4094_v6 = vsel %vm3130_vm10, 4294967295, %v4093_v6  ;;  %vm3135_vm4 = vcmp.eq.s32.totalorder %v388_v38, %v2728_v20  ;;  %v269_v36 = vand.u32 31, %v3089_v58  ;;  %vm3147_vm7 = vcmp.eq.s32.totalorder %v276_v39, %v2622_v43  ;;  %2139 = vmatpush.msk.msrb.mxu2 %vm3130_vm10, %v4061_v15 }
  0x51   :  { %4095 = vst [vmem:[#allocation46_spill] sm:$0xff] %v4094_v6  ;;  %v4097_v44 = vsel %vm3135_vm4, 4294967295, %v4096_v44  ;;  %v4098_v1 = vmov 0  ;;  %vm3152_vm5 = vcmp.eq.s32.totalorder %v388_v38, %v2622_v43  ;;  %v381_v58 = vand.u32 31, %v3092_v33  ;;  %2155 = vmatpush.msk.msrb.mxu3 %vm3135_vm4, %v4061_v15  ;;  %2171 = vmatpush.msk.msra.mxu0 %vm3147_vm7, %v4061_v15 }
  0x52   :  { %v4099_v1 = vsel %vm3147_vm7, 4294967295, %v4098_v1  ;;  %v4102_v29 = vsel %vm3152_vm5, 4294967295, %v4101_v29  ;;  %vm3165_vm9 = vcmp.eq.s32.totalorder %v269_v36, %v2728_v20  ;;  %v4104_v39 = vmov 0  ;;  %2187 = vmatpush.msk.msra.mxu1 %vm3152_vm5, %v4061_v15 }
  0x53   :  { %4100 = vst [vmem:[#allocation47_spill] sm:$0xff] %v4099_v1  ;;  %v4105_v39 = vsel %vm3165_vm9, 4294967295, %v4104_v39  ;;  %vm3170_vm8 = vcmp.eq.s32.totalorder %v269_v36, %v2622_v43  ;;  %v4107_v38 = vmov 0  ;;  %v255_v33 = vand.u32 31, %v2594_v28  ;;  %2140 = vmatpush.msk.msrb.mxu2 %vm3165_vm9, %v4061_v15 }
  0x54   :  { %4103 = vst [vmem:[#allocation48_spill] sm:$0xff] %v4102_v29  ;;  %v4108_v38 = vsel %vm3170_vm8, 4294967295, %v4107_v38  ;;  %vm3185_vm10 = vcmp.eq.s32.totalorder %v381_v58, %v2728_v20  ;;  %vm3190_vm4 = vcmp.eq.s32.totalorder %v381_v58, %v2622_v43  ;;  %v4113_v36 = vmov 0  ;;  %2172 = vmatpush.msk.msra.mxu0 %vm3170_vm8, %v4061_v15 }
  0x55   :  { %4106 = vst [vmem:[#allocation49_spill] sm:$0xff] %v4105_v39  ;;  %v4112_v35 = vsel %vm3185_vm10, 4294967295, %v4111_v35  ;;  %v4114_v36 = vsel %vm3190_vm4, 4294967295, %v4113_v36  ;;  %vm3195_vm6 = vcmp.eq.s32.totalorder %v262_v37, %v2728_v20  ;;  %v4115_v6 = vmov 0  ;;  %2156 = vmatpush.msk.msrb.mxu3 %vm3185_vm10, %v4061_v15  ;;  %2188 = vmatpush.msk.msra.mxu1 %vm3190_vm4, %v4061_v15 }
  0x56   :  { %4109 = vst [vmem:[#allocation50_spill] sm:$0xff] %v4108_v38  ;;  %v4116_v6 = vsel %vm3195_vm6, 4294967295, %v4115_v6  ;;  %v3200_v1 = vadd.s32 128, %v2594_v28  ;;  %v374_v58 = vand.u32 31, %v3175_v56  ;;  %vm3210_vm7 = vcmp.eq.s32.totalorder %v262_v37, %v2622_v43  ;;  %2141 = vmatpush.msk.msrb.mxu2 %vm3195_vm6, %v4061_v15 }
  0x57   :  { %vm3221_vm9 = vcmp.eq.s32.totalorder %v255_v33, %v2728_v20  ;;  %vm3240_vm4 = vcmp.eq.s32.totalorder %v255_v33, %v2622_v43  ;;  %2173 = vmatpush.msk.msra.mxu0 %vm3210_vm7, %v4061_v15  ;;  %v3269_v33 = vld [vmem:[%s3844_s3] sm:$0x77] }
  0x58   :  { %4117 = vst [vmem:[#allocation52_spill] sm:$0xff] %v3200_v1  ;;  %v367_v56 = vand.u32 31, %v3200_v1  ;;  %vm3230_vm10 = vcmp.eq.s32.totalorder %v374_v58, %v2728_v20  ;;  %vm3235_vm8 = vcmp.eq.s32.totalorder %v374_v58, %v2622_v43  ;;  %2142 = vmatpush.msk.msrb.mxu2 %vm3221_vm9, %v4061_v15 }
  0x59   :  { %2157 = vmatpush.msk.msrb.mxu3 %vm3230_vm10, %v4061_v15  ;;  %2189 = vmatpush.msk.msra.mxu1 %vm3235_vm8, %v4061_v15 }
  0x5a   :  { %vm3251_vm6 = vcmp.eq.s32.totalorder %v367_v56, %v2728_v20  ;;  %vm3256_vm5 = vcmp.eq.s32.totalorder %v367_v56, %v2622_v43  ;;  %2174 = vmatpush.msk.msra.mxu0 %vm3240_vm4, %v4061_v15  ;;  %2191 = vmatpush.msk.msra.mxu2 %vm2768_vm12, %v4061_v15  ;;  %v95_v43 = vperm.slane %v3269_v33, 0  ;;  %v96_v20 = vperm.slane %v3269_v33, 4 }
  0x5b   :  { %2158 = vmatpush.msk.msrb.mxu3 %vm3251_vm6, %v4061_v15  ;;  %2190 = vmatpush.msk.msra.mxu1 %vm3256_vm5, %v4061_v15  ;;  %vm4137_vm12 = vnez %v4016_v46 }
  0x5c   :  { %2223 = vmatpush.msk.msrb.mxu0 %vm2634_vm0, %v4061_v15  ;;  %2192 = vmatpush.msk.msra.mxu2 %vm2788_vm14, %v4061_v15  ;;  %vm4132_vm0 = vnez %v3985_v0  ;;  %v99_v52 = vperm.slane %v95_v43, 0  ;;  %v100_v53 = vperm.slane %v96_v20, 0  ;;  %vm4139_vm14 = vnez %v3988_v2  ;;  %v4180_v56 = vld [vmem:[#allocation49_spill] sm:$0xff] }
  0x5d   :  { %2207 = vmatpush.msk.msra.mxu3 %vm2778_vm13, %v4061_v15  ;;  %2239 = vmatpush.msk.msrb.mxu1 %vm2641_vm1, %v4061_v15  ;;  %vm4133_vm1 = vnez %v4012_v42  ;;  %vm4138_vm13 = vnez %v4022_v49  ;;  %v2407_v43 = vld [vmem:[#allocation7 + $0x38] sm:$0xff] }
  0x5e   :  { %2224 = vmatpush.msk.msrb.mxu0 %vm2654_vm2, %v4061_v15  ;;  %2193 = vmatpush.msk.msra.mxu2 %vm4133_vm1, %v4061_v15  ;;  %vm4136_vm2 = vnez %v3994_v17  ;;  %vm4142_vm1 = vnez %v4026_v51  ;;  %v2415_v20 = vld [vmem:[#allocation7 + $0x78] sm:$0xff] }
  0x5f   :  { %2208 = vmatpush.msk.msra.mxu3 %vm2798_vm15, %v4061_v15  ;;  %2240 = vmatpush.msk.msrb.mxu1 %vm2662_vm3, %v4061_v15  ;;  %vm4134_vm3 = vnez %v4018_v47  ;;  %vm4140_vm15 = vnez %v3998_v22 }
  0x60   :  { %2194 = vmatpush.msk.msra.mxu2 %vm4137_vm12, %v4061_v15 }
  0x61   :  { %2209 = vmatpush.msk.msra.mxu3 %vm2815_vm11, %v4061_v15  ;;  %2241 = vmatpush.msk.msrb.mxu1 %vm4132_vm0, %v4061_v15  ;;  %vm4135_vm11 = vnez %v3983_v61  ;;  %vm4141_vm0 = vnez %v4020_v48 }
  0x62   :  { %2225 = vmatpush.msk.msrb.mxu0 %vm4135_vm11, %v4061_v15  ;;  %2195 = vmatpush.msk.msra.mxu2 %vm4141_vm0, %v4061_v15  ;;  %vm4144_vm11 = vnez %v4002_v24 }
  0x63   :  { %2210 = vmatpush.msk.msra.mxu3 %vm4134_vm3, %v4061_v15  ;;  %2242 = vmatpush.msk.msrb.mxu1 %vm4136_vm2, %v4061_v15  ;;  %vm4143_vm3 = vnez %v3996_v21  ;;  %vm4145_vm2 = vnez %v4024_v50  ;;  %v4172_v50 = vld [vmem:[#allocation48_spill] sm:$0xff] }
  0x64   :  { %2226 = vmatpush.msk.msrb.mxu0 %vm4139_vm14, %v4061_v15  ;;  %2196 = vmatpush.msk.msra.mxu2 %vm4145_vm2, %v4061_v15  ;;  %vm4146_vm14 = vnez %v4034_v8  ;;  %vm4151_vm2 = vnez %v4036_v9 }
  0x65   :  { %2211 = vmatpush.msk.msra.mxu3 %vm4138_vm13, %v4061_v15  ;;  %2243 = vmatpush.msk.msrb.mxu1 %vm4140_vm15, %v4061_v15  ;;  %vm787_vm13 = vcmask 1041408   ;;  %vm4147_vm15 = vnez %v4000_v23 }
  0x66   :  { %2227 = vmatpush.msk.msrb.mxu0 %vm4143_vm3, %v4061_v15  ;;  %vm4149_vm3 = vnez %v4032_v3 }
  0x67   :  { %2212 = vmatpush.msk.msra.mxu3 %vm4142_vm1, %v4061_v15  ;;  %2244 = vmatpush.msk.msrb.mxu1 %vm4144_vm11, %v4061_v15  ;;  %vm4148_vm1 = vnez %v4038_v10  ;;  %vm4150_vm11 = vnez %v4046_v19 }
  0x68   :  { %2228 = vmatpush.msk.msrb.mxu0 %vm4147_vm15, %v4061_v15  ;;  %2197 = vmatpush.msk.msra.mxu2 %vm4149_vm3, %v4061_v15  ;;  %vm4154_vm15 = vnez %v4056_v13  ;;  %vm4157_vm3 = vnez %v4054_v14 }
  0x69   :  { %2213 = vmatpush.msk.msra.mxu3 %vm4146_vm14, %v4061_v15  ;;  %2245 = vmatpush.msk.msrb.mxu1 %vm4148_vm1, %v4061_v15  ;;  %vm4152_vm14 = vnez %v4050_v26  ;;  %vm4156_vm1 = vnez %v4060_v16 }
  0x6a   :  { %2229 = vmatpush.msk.msrb.mxu0 %vm4151_vm2, %v4061_v15  ;;  %vm4159_vm2 = vnez %v4058_v54 }
  0x6b   :  { %2214 = vmatpush.msk.msra.mxu3 %vm4150_vm11, %v4061_v15  ;;  %2246 = vmatpush.msk.msrb.mxu1 %vm4152_vm14, %v4061_v15  ;;  %vm4158_vm11 = vnez %v4065_v27  ;;  %vm4160_vm14 = vnez %v4069_v62 }
  0x6d   :  { %2215 = vmatpush.msk.msra.mxu3 %vm4154_vm15, %v4061_v15  ;;  %2247 = vmatpush.msk.msrb.mxu1 %vm4156_vm1, %v4061_v15  ;;  %vm4162_vm15 = vnez %v4079_v63  ;;  %vm4164_vm1 = vnez %v4081_v7 }
  0x6f   :  { %2216 = vmatpush.msk.msra.mxu3 %vm4158_vm11, %v4061_v15  ;;  %2248 = vmatpush.msk.msrb.mxu1 %vm4160_vm14, %v4061_v15  ;;  %vm4166_vm11 = vnez %v4087_v4  ;;  %vm4168_vm14 = vnez %v4092_v34  ;;  %v4174_v34 = vld [vmem:[#allocation46_spill] sm:$0xff] }
  0x71   :  { %2217 = vmatpush.msk.msra.mxu3 %vm4162_vm15, %v4061_v15  ;;  %2249 = vmatpush.msk.msrb.mxu1 %vm4164_vm1, %v4061_v15  ;;  %vm4170_vm15 = vnez %v4097_v44  ;;  %vm4173_vm1 = vnez %v4172_v50  ;;  %v4177_v44 = vld [vmem:[#allocation47_spill] sm:$0xff] }
  0x73   :  { %2218 = vmatpush.msk.msra.mxu3 %vm4166_vm11, %v4061_v15  ;;  %2250 = vmatpush.msk.msrb.mxu1 %vm4168_vm14, %v4061_v15  ;;  %vm4176_vm11 = vnez %v4112_v35  ;;  %vm4179_vm14 = vnez %v4114_v36  ;;  %v4182_v35 = vld [vmem:[#allocation50_spill] sm:$0xff] }
  0x75   :  { %2219 = vmatpush.msk.msra.mxu3 %vm4170_vm15, %v4061_v15  ;;  %2251 = vmatpush.msk.msrb.mxu1 %vm4173_vm1, %v4061_v15  ;;  %vm4183_vm15 = vnez %v4182_v35 }
  0x77   :  { %2220 = vmatpush.msk.msra.mxu3 %vm4176_vm11, %v4061_v15  ;;  %2252 = vmatpush.msk.msrb.mxu1 %vm4179_vm14, %v4061_v15 }
  0x79   :  { %2221 = vmatpush.msk.msra.mxu3 %vm3230_vm10, %v4061_v15  ;;  %2253 = vmatpush.msk.msrb.mxu1 %vm3235_vm8, %v4061_v15 }
  0x7b   :  { %2222 = vmatpush.msk.msra.mxu3 %vm3251_vm6, %v4061_v15  ;;  %2254 = vmatpush.msk.msrb.mxu1 %vm3256_vm5, %v4061_v15 }
  0xb8   :  { %v190_v55 = vpop.f32.mrf.mxu2 }
  0xb9   :  { %v191_v61 = vadd.f32 %v190_v55, %v99_v52  ;;  %v203_v0 = vpop.f32.mrf.mxu3  ;;  %v2406_v52 = vld [vmem:[#allocation7 + $0x30] sm:$0xff]  ;;  %v2405_v55 = vld [vmem:[#allocation7 + $0x28] sm:$0xff] }
  0xba   :  { %v204_v2 = vadd.f32 %v203_v0, %v100_v53  ;;  %v2414_v53 = vld [vmem:[#allocation7 + $0x70] sm:$0xff] }
  0xbb   :  { %vm208_vm12 = vcmp.ge.f32.partialorder %v191_v61, 0.0  ;;  %v211_v17 = vmul.f32 %v210_v60, %v191_v61 }
  0xbc   :  { %vm209_vm0 = vcmp.ge.f32.partialorder %v204_v2, 0.0  ;;  %v212_v21 = vmul.f32 %v210_v60, %v204_v2  ;;  %v2413_v60 = vld [vmem:[#allocation7 + $0x68] sm:$0xff] }
  0xbd   :  { %v3366_v22 = vsel %vm208_vm12, %v191_v61, %v211_v17  ;;  %vm4153_vm12 = vnez %v4044_v18  ;;  %v2412_v17 = vld [vmem:[#allocation7 + $0x60] sm:$0xff] }
  0xbe   :  { %v788_v23 = vsel %vm787_vm13, %v3366_v22, 0.0  ;;  %v3376_v24 = vsel %vm209_vm0, %v204_v2, %v212_v21  ;;  %2198 = vmatpush.msk.msra.mxu2 %vm4153_vm12, %v4061_v15  ;;  %vm4155_vm0 = vnez %v4048_v25  ;;  %vm4161_vm12 = vnez %v4063_v57  ;;  %v2404_v2 = vld [vmem:[#allocation7 + $0x20] sm:$0xff] }
  0xbf   :  { %v789_v30 = vrot.slane %v788_v23, 4  ;;  %v795_v32 = vsel %vm787_vm13, %v3376_v24, 0.0  ;;  %2230 = vmatpush.msk.msrb.mxu0 %vm4155_vm0, %v4061_v15  ;;  %vm4163_vm0 = vnez %v4067_v31 }
  0xc0   :  { %v796_v40 = vrot.slane %v795_v32, 4  ;;  %v192_v41 = vpop.f32.mrf.mxu2  ;;  %2199 = vmatpush.msk.msra.mxu2 %vm4157_vm3, %v4061_v15  ;;  %vm4165_vm3 = vnez %v4073_v59 }
  0xc1   :  { %v205_v42 = vpop.f32.mrf.mxu3  ;;  %v790_v45 = vadd.f32 %v789_v30, %v788_v23  ;;  %2231 = vmatpush.msk.msrb.mxu0 %vm4159_vm2, %v4061_v15  ;;  %vm4167_vm2 = vnez %v4075_v12  ;;  %v2403_v30 = vld [vmem:[#allocation7 + $0x18] sm:$0xff] }
  0xc2   :  { %v797_v46 = vadd.f32 %v796_v40, %v795_v32  ;;  %2200 = vmatpush.msk.msra.mxu2 %vm4161_vm12, %v4061_v15  ;;  %vm4169_vm12 = vnez %v4085_v11  ;;  %v2411_v32 = vld [vmem:[#allocation7 + $0x58] sm:$0xff] }
  0xc3   :  { %v791_v47 = vrot.slane %v790_v45, 2  ;;  %2232 = vmatpush.msk.msrb.mxu0 %vm4163_vm0, %v4061_v15  ;;  %vm4171_vm0 = vnez %v4089_v5 }
  0xc4   :  { %v798_v54 = vrot.slane %v797_v46, 2  ;;  %2201 = vmatpush.msk.msra.mxu2 %vm4165_vm3, %v4061_v15  ;;  %vm4175_vm3 = vnez %v4174_v34 }
  0xc5   :  { %v792_v48 = vadd.f32 %v791_v47, %v790_v45  ;;  %2233 = vmatpush.msk.msrb.mxu0 %vm4167_vm2, %v4061_v15  ;;  %vm4178_vm2 = vnez %v4177_v44  ;;  %v2402_v47 = vld [vmem:[#allocation7 + $0x10] sm:$0xff]  ;;  %v2408_v44 = vld [vmem:[#allocation7 + $0x40] sm:$0xff] }
  0xc6   :  { %v799_v49 = vadd.f32 %v798_v54, %v797_v46  ;;  %2202 = vmatpush.msk.msra.mxu2 %vm4169_vm12, %v4061_v15  ;;  %vm4181_vm12 = vnez %v4180_v56  ;;  %v2410_v54 = vld [vmem:[#allocation7 + $0x50] sm:$0xff] }
  0xc7   :  { %v793_v7 = vrot.slane %v792_v48, 1  ;;  %2234 = vmatpush.msk.msrb.mxu0 %vm4171_vm0, %v4061_v15  ;;  %vm4184_vm0 = vnez %v4116_v6 }
  0xc8   :  { %v800_v4 = vrot.slane %v799_v49, 1  ;;  %2203 = vmatpush.msk.msra.mxu2 %vm4175_vm3, %v4061_v15 }
  0xc9   :  { %v794_v51 = vadd.f32 %v793_v7, %v792_v48  ;;  %2235 = vmatpush.msk.msrb.mxu0 %vm4178_vm2, %v4061_v15  ;;  %v2409_v7 = vld [vmem:[#allocation7 + $0x48] sm:$0xff] }
  0xca   :  { %v801_v5 = vadd.f32 %v800_v4, %v799_v49  ;;  %2204 = vmatpush.msk.msra.mxu2 %vm4181_vm12, %v4061_v15  ;;  %v2401_v49 = vld [vmem:[#allocation7 + $0x8] sm:$0xff] }
  0xcb   :  { %818 = vmatmul.f32.vlgmr.msrb.gmra.mxu2 %v794_v51  ;;  %858 = vmatmul.f32.vlgmr.msra.gmra.mxu0 %v794_v51  ;;  %v2400_v51 = vld [vmem:[#allocation7] sm:$0xff] }
  0xcc   :  { %838 = vmatmul.f32.vlgmr.msrb.gmra.mxu3 %v801_v5  ;;  %878 = vmatmul.f32.vlgmr.msra.gmra.mxu1 %v801_v5 }
  0xcd   :  { %2236 = vmatpush.msk.msrb.mxu0 %vm4183_vm15, %v4061_v15  ;;  %2205 = vmatpush.msk.msra.mxu2 %vm4184_vm0, %v4061_v15 }
  0xce   :  { %1491 = vmatpush.bf16.msrb.mxu3 %v2415_v20 }
  0xcf   :  { %2237 = vmatpush.msk.msrb.mxu0 %vm3210_vm7, %v4061_v15  ;;  %2206 = vmatpush.msk.msra.mxu2 %vm3221_vm9, %v4061_v15  ;;  %vm1011_vm9 = vcmask 1043456  }
  0xd1   :  { %2238 = vmatpush.msk.msrb.mxu0 %vm3240_vm4, %v4061_v15  ;;  %1478 = vmatpush.bf16.msrb.mxu2 %v2407_v43 }
  0xd2   :  { %1492 = vmatpush.bf16.msrb.mxu3 %v2414_v53  ;;  %v4191_v53 = vld [vmem:[#allocation16_spill] sm:$0xff] }
  0xd5   :  { %1479 = vmatpush.bf16.msrb.mxu2 %v2406_v52  ;;  %v4190_v52 = vld [vmem:[#allocation17_spill] sm:$0xff] }
  0xd6   :  { %1493 = vmatpush.bf16.msrb.mxu3 %v2413_v60 }
  0xd9   :  { %1480 = vmatpush.bf16.msrb.mxu2 %v2405_v55  ;;  %v4192_v55 = vld [vmem:[#allocation21_spill] sm:$0xff] }
  0xda   :  { %1494 = vmatpush.bf16.msrb.mxu3 %v2412_v17 }
  0xdd   :  { %1481 = vmatpush.bf16.msrb.mxu2 %v2404_v2 }
  0xde   :  { %1495 = vmatpush.bf16.msrb.mxu3 %v2411_v32  ;;  %v4193_v32 = vld [vmem:[#allocation22_spill] sm:$0xff] }
  0xe1   :  { %1482 = vmatpush.bf16.msrb.mxu2 %v2403_v30 }
  0xe2   :  { %1496 = vmatpush.bf16.msrb.mxu3 %v2410_v54  ;;  %v4197_v54 = vld [vmem:[#allocation25_spill] sm:$0xff] }
  0xe5   :  { %1483 = vmatpush.bf16.msrb.mxu2 %v2402_v47  ;;  %v4196_v47 = vld [vmem:[#allocation28_spill] sm:$0xff] }
  0xe6   :  { %1497 = vmatpush.bf16.msrb.mxu3 %v2409_v7 }
  0xe9   :  { %1484 = vmatpush.bf16.msrb.mxu2 %v2401_v49 }
  0xea   :  { %1498 = vmatpush.bf16.msrb.mxu3 %v2408_v44 }
  0xed   :  { %1485 = vmatpush.bf16.msrb.mxu2 %v2400_v51  ;;  %v4201_v51 = vld [vmem:[#allocation32_spill] sm:$0xff] }
 0x148   :  { %v859_v57 = vpop.f32.mrf.mxu0 }
 0x149   :  { %v879_v62 = vpop.f32.mrf.mxu1 }
 0x14a   :  { %v880_v3 = vadd.f32 %v879_v62, %v859_v57 }
 0x14c   :  { %v3485_v8 = vmul.f32 0.0625, %v880_v3 }
 0x14e   :  { %v885_v9 = vperm.slane %v3485_v8, 0  ;;  %v819_v10 = vpop.f32.mrf.mxu2 }
 0x14f   :  { %v839_v13 = vpop.f32.mrf.mxu3 }
 0x150   :  { %v887_v29 = vsub.f32 %v3376_v24, %v885_v9  ;;  %v840_v14 = vadd.f32 %v839_v13, %v819_v10 }
 0x152   :  { %v889_v16 = vmul.f32 %v887_v29, %v887_v29  ;;  %v3489_v18 = vmul.f32 0.0625, %v840_v14 }
 0x154   :  { %v897_v28 = vsel %vm787_vm13, %v889_v16, 0.0  ;;  %v884_v19 = vperm.slane %v3489_v18, 0 }
 0x155   :  { %v898_v25 = vrot.slane %v897_v28, 4 }
 0x156   :  { %v886_v26 = vsub.f32 %v3366_v22, %v884_v19 }
 0x157   :  { %v899_v11 = vadd.f32 %v898_v25, %v897_v28 }
 0x158   :  { %v888_v12 = vmul.f32 %v886_v26, %v886_v26 }
 0x159   :  { %v900_v27 = vrot.slane %v899_v11, 2 }
 0x15a   :  { %v890_v31 = vsel %vm787_vm13, %v888_v12, 0.0  ;;  %v4185_v12 = vld [vmem:[#allocation18_spill] sm:$0xff] }
 0x15b   :  { %v891_v59 = vrot.slane %v890_v31, 4  ;;  %v901_v63 = vadd.f32 %v900_v27, %v899_v11  ;;  %v4186_v27 = vld [vmem:[#allocation20_spill] sm:$0xff]  ;;  %vm1126_vm2 = vcmp.eq.s32.totalorder %v4190_v52, %v4185_v12  ;;  %vm1122_vm15 = vcmp.eq.s32.totalorder %v4193_v32, %v4185_v12  ;;  %v4214_v52 = vld [vmem:[#allocation42_spill] sm:$0xff] }
 0x15c   :  { %vm1124_vm1 = vcmp.eq.s32.totalorder %v4186_v27, %v4185_v12 }
 0x15d   :  { %v892_v6 = vadd.f32 %v891_v59, %v890_v31  ;;  %v902_v1 = vrot.slane %v901_v63, 1  ;;  %v4187_v31 = vld [vmem:[#allocation15_spill] sm:$0xff] }
 0x15e   :  { %v4188_v59 = vld [vmem:[#allocation19_spill] sm:$0xff]  ;;  %vm1093_vm14 = vcmp.eq.s32.totalorder %v4191_v53, %v4187_v31  ;;  %vm1089_vm12 = vcmp.eq.s32.totalorder %v4192_v55, %v4187_v31 }
 0x15f   :  { %v893_v39 = vrot.slane %v892_v6, 2  ;;  %v903_v38 = vadd.f32 %v902_v1, %v901_v63  ;;  %vm1091_vm3 = vcmp.eq.s32.totalorder %v4188_v59, %v4187_v31  ;;  %v4189_v63 = vld [vmem:[#allocation23_spill] sm:$0xff] }
 0x160   :  { %vm1087_vm11 = vcmp.eq.s32.totalorder %v4189_v63, %v4187_v31 }
 0x161   :  { %940 = vmatmul.f32.vlgmr.msra.gmra.mxu3 %v903_v38  ;;  %980 = vmatmul.f32.vlgmr.msrb.gmra.mxu1 %v903_v38  ;;  %v894_v36 = vadd.f32 %v893_v39, %v892_v6 }
 0x163   :  { %v895_v37 = vrot.slane %v894_v36, 1 }
 0x165   :  { %v896_v58 = vadd.f32 %v895_v37, %v894_v36 }
 0x167   :  { %920 = vmatmul.f32.vlgmr.msra.gmra.mxu2 %v896_v58  ;;  %960 = vmatmul.f32.vlgmr.msrb.gmra.mxu0 %v896_v58 }
 0x1de   :  { %v981_v61 = vpop.f32.mrf.mxu1 }
 0x1e4   :  { %v961_v0 = vpop.f32.mrf.mxu0  ;;  %v941_v41 = vpop.f32.mrf.mxu3 }
 0x1e5   :  { %v982_v21 = vadd.f32 %v981_v61, %v961_v0 }
 0x1e7   :  { %v985_v23 = vmul.f32 0.0625, %v982_v21 }
 0x1e9   :  { %v987_v40 = vadd.f32 1e-05, %v985_v23 }
 0x1ea   :  { %v921_v42 = vpop.f32.mrf.mxu2 }
 0x1eb   :  { %2433 = vrsqrt.f32 %v987_v40  ;;  %v942_v45 = vadd.f32 %v941_v41, %v921_v42  ;;  %vm1004_vm5 = vweird.f32 %v987_v40  ;;  %v4195_v41 = vld [vmem:[#allocation27_spill] sm:$0xff] }
 0x1ed   :  { %v984_v46 = vmul.f32 0.0625, %v942_v45 }
 0x1ef   :  { %v986_v48 = vadd.f32 1e-05, %v984_v46 }
 0x1f1   :  { %v2434_v4 = vpop.eup %2433  ;;  %2435 = vrsqrt.f32 %v986_v48  ;;  %vm994_vm8 = vweird.f32 %v986_v48 }
 0x1f2   :  { %v999_v50 = vmul.f32 %v2434_v4, %v987_v40  ;;  %vm1005_vm4 = vweird.f32 %v2434_v4  ;;  %v4194_v40 = vld [vmem:[#allocation24_spill] sm:$0xff] }
 0x1f3   :  { %vm1006_vm6 = vmor %vm1004_vm5, %vm1005_vm4  ;;  %vm1120_vm0 = vcmp.eq.s32.totalorder %v4194_v40, %v4185_v12  ;;  %vm1083_vm4 = vcmp.eq.s32.totalorder %v4195_v41, %v4187_v31  ;;  %vm1116_vm5 = vcmp.eq.s32.totalorder %v4196_v47, %v4185_v12  ;;  %v1043_v47 = vld [vmem:[#allocation7 + $0x30] sm:$0xff]  }
 0x1f4   :  { %v1000_v34 = vmul.f32 %v2434_v4, %v999_v50  ;;  %v4199_v50 = vld [vmem:[#allocation29_spill] sm:$0xff] }
 0x1f6   :  { %v1001_v5 = vmul.f32 0.5, %v1000_v34  ;;  %v4200_v34 = vld [vmem:[#allocation31_spill] sm:$0xff] }
 0x1f7   :  { %v2436_v56 = vpop.eup %2435 }
 0x1f8   :  { %v1002_v35 = vsub.f32 1.5, %v1001_v5  ;;  %v989_v57 = vmul.f32 %v2436_v56, %v986_v48  ;;  %vm995_vm7 = vweird.f32 %v2436_v56  ;;  %v4198_v48 = vld [vmem:[#allocation26_spill] sm:$0xff] }
 0x1f9   :  { %vm996_vm10 = vmor %vm994_vm8, %vm995_vm7  ;;  %vm1118_vm7 = vcmp.eq.s32.totalorder %v4198_v48, %v4185_v12  ;;  %vm1081_vm8 = vcmp.eq.s32.totalorder %v4199_v50, %v4187_v31 }
 0x1fa   :  { %v1003_v62 = vmul.f32 %v2434_v4, %v1002_v35  ;;  %v990_v3 = vmul.f32 %v2436_v56, %v989_v57  ;;  %v4202_v35 = vld [vmem:[#allocation30_spill] sm:$0xff]  ;;  %v4203_v57 = vld [vmem:[#allocation35_spill] sm:$0xff] }
 0x1fc   :  { %v991_v9 = vmul.f32 0.5, %v990_v3  ;;  %v1007_v10 = vsel %vm1006_vm6, %v2434_v4, %v1003_v62  ;;  %vm1085_vm6 = vcmp.eq.s32.totalorder %v4197_v54, %v4187_v31  ;;  %v4204_v62 = vld [vmem:[#allocation33_spill] sm:$0xff] }
 0x1fd   :  { %v1010_v14 = vrot.slane %v1007_v10, 4 }
 0x1fe   :  { %v992_v13 = vsub.f32 1.5, %v991_v9 }
 0x200   :  { %v993_v29 = vmul.f32 %v2436_v56, %v992_v13  ;;  %v4205_v13 = vld [vmem:[#allocation36_spill] sm:$0xff] }
 0x202   :  { %v997_v16 = vsel %vm996_vm10, %v2436_v56, %v993_v29  ;;  %vm1112_vm10 = vcmp.eq.s32.totalorder %v4201_v51, %v4185_v12  ;;  %v4206_v29 = vld [vmem:[#allocation34_spill] sm:$0xff] }
 0x203   :  { %v1012_v28 = vsel %vm1011_vm9, %v997_v16, %v1010_v14  ;;  %v4207_v14 = vld [vmem:[#allocation39_spill] sm:$0xff] }
 0x204   :  { %v1013_v19 = vrot.slane %v1012_v28, 7 }
 0x206   :  { %v1015_v25 = vmul.f32 %v1013_v19, %v3269_v33 }
 0x208   :  { %v1017_v26 = vperm.slane %v1015_v25, 1  ;;  %v1018_v11 = vperm.slane %v1015_v25, 5  ;;  %v4208_v25 = vld [vmem:[#allocation40_spill] sm:$0xff] }
 0x20a   :  { %v3503_v6 = vperm.slane %v1017_v26, 1  ;;  %v3505_v1 = vperm.slane %v1018_v11, 1  ;;  %v1022_v39 = vmul.f32 %v1018_v11, %v3485_v8  ;;  %v1021_v58 = vmul.f32 %v1017_v26, %v3489_v18  ;;  %v4209_v26 = vld [vmem:[#allocation37_spill] sm:$0xff]  ;;  %v4210_v11 = vld [vmem:[#allocation38_spill] sm:$0xff] }
 0x20c   :  { %v1190_v38 = vsel %vm1124_vm1, %v3505_v1, 0.0  ;;  %v1157_v36 = vsel %vm1091_vm3, %v3503_v6, 0.0  ;;  %v1153_v37 = vsel %vm1087_vm11, %v3503_v6, 0.0  ;;  %v1025_v43 = vrot.slane %v1022_v39, 4 }
 0x20d   :  { %1284 = vadd.xlane.f32.xlu1 %v1190_v38  ;;  %1236 = vadd.xlane.f32.xlu0 %v1157_v36  ;;  %v1192_v61 = vsel %vm1126_vm2, %v3505_v1, 0.0  ;;  %v1159_v18 = vsel %vm1093_vm14, %v3503_v6, 0.0  ;;  %v1155_v17 = vsel %vm1089_vm12, %v3503_v6, 0.0  ;;  %v1188_v42 = vsel %vm1122_vm15, %v3505_v1, 0.0  ;;  %v4211_v36 = vld [vmem:[#allocation41_spill] sm:$0xff] }
 0x20e   :  { %1230 = vadd.xlane.f32.xlu2 %v1153_v37  ;;  %v1026_v8 = vsel %vm1011_vm9, %v1021_v58, %v1025_v43  ;;  %v1186_v45 = vsel %vm1120_vm0, %v3505_v1, 0.0  ;;  %v1149_v46 = vsel %vm1083_vm4, %v3503_v6, 0.0  ;;  %v1182_v49 = vsel %vm1116_vm5, %v3505_v1, 0.0  ;;  %v4212_v37 = vld [vmem:[#allocation43_spill] sm:$0xff]  ;;  %v4213_v58 = vld [vmem:[#allocation44_spill] sm:$0xff] }
 0x20f   :  { %v1027_v20 = vrot.slane %v1026_v8, 6  ;;  %v1151_v7 = vsel %vm1085_vm6, %v3503_v6, 0.0  ;;  %v1184_v4 = vsel %vm1118_vm7, %v3505_v1, 0.0  ;;  %vm1079_vm9 = vcmp.eq.s32.totalorder %v4200_v34, %v4187_v31 }
 0x210   :  { %v1147_v44 = vsel %vm1081_vm8, %v3503_v6, 0.0  ;;  %v1145_v5 = vsel %vm1079_vm9, %v3503_v6, 0.0  ;;  %v1178_v56 = vsel %vm1112_vm10, %v3505_v1, 0.0  ;;  %vm1114_vm1 = vcmp.eq.s32.totalorder %v4202_v35, %v4185_v12 }
 0x211   :  { %v1029_v60 = vsub.f32 %v3269_v33, %v1027_v20  ;;  %vm1075_vm2 = vcmp.eq.s32.totalorder %v4203_v57, %v4187_v31  ;;  %vm3957_vm15 = vcmp.eq.s32.totalorder %v4204_v62, %v4187_v31  ;;  %v1180_v3 = vsel %vm1114_vm1, %v3505_v1, 0.0 }
 0x212   :  { %v1141_v9 = vsel %vm1075_vm2, %v3503_v6, 0.0  ;;  %v1143_v10 = vsel %vm3957_vm15, %v3503_v6, 0.0  ;;  %vm1108_vm0 = vcmp.eq.s32.totalorder %v4205_v13, %v4185_v12  ;;  %vm1110_vm5 = vcmp.eq.s32.totalorder %v4206_v29, %v4185_v12 }
 0x213   :  { %v1370_v0 = vperm.slane %v1029_v60, 2  ;;  %v1371_v2 = vperm.slane %v1029_v60, 6  ;;  %vm3958_vm7 = vcmp.eq.s32.totalorder %v4207_v14, %v4187_v31  ;;  %v1174_v16 = vsel %vm1108_vm0, %v3505_v1, 0.0  ;;  %v4215_v60 = vld [vmem:[#allocation14_spill] sm:$0xff] }
 0x214   :  { %v1176_v28 = vsel %vm1110_vm5, %v3505_v1, 0.0  ;;  %v1137_v19 = vsel %vm3958_vm7, %v3503_v6, 0.0  ;;  %vm1104_vm10 = vcmp.eq.s32.totalorder %v4208_v25, %v4185_v12  ;;  %vm3959_vm1 = vcmp.eq.s32.totalorder %v4209_v26, %v4187_v31 }
 0x215   :  { %1287 = vadd.xlane.f32.xlu1 %v1192_v61  ;;  %1239 = vadd.xlane.f32.xlu0 %v1159_v18  ;;  %v1374_v21 = vpack.c.bf16 %v1370_v0, %v1370_v0  ;;  %v1375_v23 = vpack.c.bf16 %v1371_v2, %v1371_v2  ;;  %vm1106_vm15 = vcmp.eq.s32.totalorder %v4210_v11, %v4185_v12  ;;  %v1170_v27 = vsel %vm1104_vm10, %v3505_v1, 0.0  ;;  %v4216_v61 = vld [vmem:[#allocation45_spill] sm:$0xff] }
 0x216   :  { %1233 = vadd.xlane.f32.xlu2 %v1155_v17  ;;  %v1139_v39 = vsel %vm3959_vm1, %v3503_v6, 0.0  ;;  %v1172_v38 = vsel %vm1106_vm15, %v3505_v1, 0.0  ;;  %vm3963_vm0 = vcmp.eq.s32.totalorder %v4211_v36, %v4187_v31  ;;  %vm3960_vm5 = vcmp.eq.s32.totalorder %v4212_v37, %v4187_v31  ;;  %v4217_v17 = vld [vmem:[#allocation52_spill] sm:$0xff] }
 0x217   :  { %v1378_v33 = vrot.slane %v1374_v21, 1  ;;  %v1379_v30 = vrot.slane %v1375_v23, 1  ;;  %vm1100_vm7 = vcmp.eq.s32.totalorder %v4213_v58, %v4185_v12  ;;  %v1135_v43 = vsel %vm3963_vm0, %v3503_v6, 0.0  ;;  %v4218_v21 = vld [vmem:[#allocation51_spill] sm:$0xff] }
 0x218   :  { %v1133_v8 = vsel %vm3960_vm5, %v3503_v6, 0.0  ;;  %v1166_v20 = vsel %vm1100_vm7, %v3505_v1, 0.0  ;;  %vm1102_vm15 = vcmp.eq.s32.totalorder %v4214_v52, %v4185_v12  ;;  %vm3962_vm10 = vcmp.eq.s32.totalorder %v4215_v60, %v4187_v31  ;;  %v1041_v58 = vld [vmem:[#allocation7 + $0x28] sm:$0xff]  }
 0x219   :  { %1486 = vmatmul.bf16.vlgmr.msrb.gmra.mxu2 %v1378_v33  ;;  %1499 = vmatmul.bf16.vlgmr.msrb.gmra.mxu3 %v1379_v30  ;;  %vm3961_vm1 = vcmp.eq.s32.totalorder %v4216_v61, %v4187_v31  ;;  %v1168_v18 = vsel %vm1102_vm15, %v3505_v1, 0.0  ;;  %v1129_v0 = vsel %vm3962_vm10, %v3503_v6, 0.0  ;;  %vm1096_vm7 = vcmp.eq.s32.totalorder %v4217_v17, %v4185_v12 }
 0x21a   :  { %v1131_v2 = vsel %vm3961_vm1, %v3503_v6, 0.0  ;;  %vm1098_vm5 = vcmp.eq.s32.totalorder %v4218_v21, %v4185_v12  ;;  %v1162_v23 = vsel %vm1096_vm7, %v3505_v1, 0.0 }
 0x21b   :  { %v1164_v33 = vsel %vm1098_vm5, %v3505_v1, 0.0 }
 0x21d   :  { %1281 = vadd.xlane.f32.xlu1 %v1188_v42  ;;  %1278 = vadd.xlane.f32.xlu0 %v1186_v45  ;;  %v1061_v42 = vld [vmem:[#allocation7 + $0x78] sm:$0xff]  }
 0x21e   :  { %1224 = vadd.xlane.f32.xlu2 %v1149_v46  ;;  %v1045_v45 = vld [vmem:[#allocation7 + $0x38] sm:$0xff]   ;;  %v1319_v6 = vunpack.c.l.bf16 %v1061_v42  ;;  %v1320_v48 = vunpack.c.h.bf16 %v1061_v42 }
 0x21f   :  { %v1303_v46 = vunpack.c.l.bf16 %v1045_v45 }
 0x225   :  { %1272 = vadd.xlane.f32.xlu1 %v1182_v49  ;;  %1227 = vadd.xlane.f32.xlu0 %v1151_v7  ;;  %v1304_v49 = vunpack.c.h.bf16 %v1045_v45  ;;  %v1302_v7 = vunpack.c.h.bf16 %v1043_v47  ;;  %v3652_v45 = vld [vmem:[%s3846_s5] sm:$0x7]  ;;  %s2319_s5 = sld [smem:[#allocation2 + $0x1]] }
 0x226   :  { %1275 = vadd.xlane.f32.xlu2 %v1184_v4  ;;  %v1301_v4 = vunpack.c.l.bf16 %v1043_v47 }
 0x22d   :  { %1221 = vadd.xlane.f32.xlu1 %v1147_v44  ;;  %1218 = vadd.xlane.f32.xlu0 %v1145_v5 }
 0x22e   :  { %1266 = vadd.xlane.f32.xlu2 %v1178_v56 }
 0x235   :  { %1269 = vadd.xlane.f32.xlu0 %v1180_v3  ;;  %1212 = vadd.xlane.f32.xlu1 %v1141_v9  ;;  %v1060_v3 = vld [vmem:[#allocation7 + $0x70] sm:$0xff]  }
 0x236   :  { %1215 = vadd.xlane.f32.xlu2 %v1143_v10 }
 0x23d   :  { %1260 = vadd.xlane.f32.xlu0 %v1174_v16  ;;  %1263 = vadd.xlane.f32.xlu1 %v1176_v28  ;;  %v1318_v16 = vunpack.c.h.bf16 %v1060_v3  ;;  %v1317_v28 = vunpack.c.l.bf16 %v1060_v3 }
 0x23e   :  { %1206 = vadd.xlane.f32.xlu2 %v1137_v19 }
 0x245   :  { %1254 = vadd.xlane.f32.xlu1 %v1170_v27  ;;  %1209 = vadd.xlane.f32.xlu0 %v1139_v39 }
 0x246   :  { %1257 = vadd.xlane.f32.xlu2 %v1172_v38 }
 0x24d   :  { %1203 = vadd.xlane.f32.xlu1 %v1135_v43  ;;  %1200 = vadd.xlane.f32.xlu0 %v1133_v8  ;;  %v1057_v43 = vld [vmem:[#allocation7 + $0x68] sm:$0xff]  }
 0x24e   :  { %1248 = vadd.xlane.f32.xlu2 %v1166_v20  ;;  %v1299_v20 = vunpack.c.l.bf16 %v1041_v58  ;;  %v1315_v52 = vunpack.c.l.bf16 %v1057_v43 }
 0x255   :  { %1251 = vadd.xlane.f32.xlu0 %v1168_v18  ;;  %1194 = vadd.xlane.f32.xlu1 %v1129_v0  ;;  %v1300_v18 = vunpack.c.h.bf16 %v1041_v58  ;;  %v1316_v0 = vunpack.c.h.bf16 %v1057_v43  ;;  %v1053_v43 = vld [vmem:[#allocation7 + $0x58] sm:$0xff]  }
 0x256   :  { %1197 = vadd.xlane.f32.xlu2 %v1131_v2 }
 0x25d   :  { %1242 = vadd.xlane.f32.xlu0 %v1162_v23  ;;  %1245 = vadd.xlane.f32.xlu1 %v1164_v33 }
 0x280   :  { %v1285_v30 = vpop.xlane.xlu1 %1284  ;;  %v1237_v32 = vpop.xlane.xlu0 %1236 }
 0x281   :  { %v1231_v40 = vpop.xlane.xlu2 %1230  ;;  %v1351_v44 = vmul.f32 %v1319_v6, %v1285_v30  ;;  %v1335_v5 = vmul.f32 %v1303_v46, %v1237_v32 }
 0x282   :  { %v1333_v29 = vmul.f32 %v1301_v4, %v1231_v40  ;;  %v1040_v40 = vld [vmem:[#allocation7 + $0x20] sm:$0xff]  }
 0x288   :  { %v1288_v51 = vpop.xlane.xlu1 %1287  ;;  %v1240_v12 = vpop.xlane.xlu0 %1239 }
 0x289   :  { %v1352_v56 = vmul.f32 %v1320_v48, %v1288_v51  ;;  %v1336_v1 = vmul.f32 %v1304_v49, %v1240_v12  ;;  %v1234_v35 = vpop.xlane.xlu2 %1233  ;;  %v1298_v48 = vunpack.c.h.bf16 %v1040_v40  ;;  %v1297_v49 = vunpack.c.l.bf16 %v1040_v40 }
 0x28a   :  { %v1334_v13 = vmul.f32 %v1302_v7, %v1234_v35  ;;  %v1038_v35 = vld [vmem:[#allocation7 + $0x18] sm:$0xff]  }
 0x28b   :  { %v1368_v9 = vpack.c.bf16 %v1352_v56, %v1351_v44  ;;  %v1360_v10 = vpack.c.bf16 %v1336_v1, %v1335_v5  ;;  %v1055_v1 = vld [vmem:[#allocation7 + $0x60] sm:$0xff]  }
 0x28c   :  { %v1359_v19 = vpack.c.bf16 %v1334_v13, %v1333_v29  ;;  %v1314_v29 = vunpack.c.h.bf16 %v1055_v1 }
 0x28d   :  { %1507 = vmatpush.bf16.msra.mxu0 %v1360_v10  ;;  %1520 = vmatpush.bf16.msra.mxu1 %v1368_v9  ;;  %v1313_v9 = vunpack.c.l.bf16 %v1055_v1 }
 0x290   :  { %v1282_v25 = vpop.xlane.xlu1 %1281  ;;  %v1279_v11 = vpop.xlane.xlu0 %1278 }
 0x291   :  { %v1350_v27 = vmul.f32 %v1318_v16, %v1282_v25  ;;  %v1349_v39 = vmul.f32 %v1317_v28, %v1279_v11  ;;  %v1225_v38 = vpop.xlane.xlu2 %1224  ;;  %1508 = vmatpush.bf16.msra.mxu0 %v1359_v19  ;;  %v1295_v16 = vunpack.c.l.bf16 %v1038_v35  ;;  %v1296_v28 = vunpack.c.h.bf16 %v1038_v35  ;;  %v1034_v35 = vld [vmem:[#allocation7 + $0x8] sm:$0xff]  }
 0x292   :  { %v1331_v21 = vmul.f32 %v1299_v20, %v1225_v38 }
 0x293   :  { %v1367_v8 = vpack.c.bf16 %v1350_v27, %v1349_v39 }
 0x295   :  { %1521 = vmatpush.bf16.msra.mxu1 %v1367_v8 }
 0x298   :  { %v1273_v2 = vpop.xlane.xlu1 %1272  ;;  %v1228_v17 = vpop.xlane.xlu0 %1227 }
 0x299   :  { %v1347_v23 = vmul.f32 %v1315_v52, %v1273_v2  ;;  %v1332_v33 = vmul.f32 %v1300_v18, %v1228_v17  ;;  %v1276_v30 = vpop.xlane.xlu2 %1275  ;;  %v1311_v52 = vunpack.c.l.bf16 %v1053_v43  ;;  %v1312_v18 = vunpack.c.h.bf16 %v1053_v43 }
 0x29a   :  { %v1348_v32 = vmul.f32 %v1316_v0, %v1276_v30  ;;  %v1051_v30 = vld [vmem:[#allocation7 + $0x50] sm:$0xff]  }
 0x29b   :  { %v1358_v42 = vpack.c.bf16 %v1332_v33, %v1331_v21  ;;  %v1035_v33 = vld [vmem:[#allocation7 + $0x10] sm:$0xff]  }
 0x29c   :  { %v1366_v6 = vpack.c.bf16 %v1348_v32, %v1347_v23  ;;  %v1487_v46 = vpop.f32.mrf.mxu2  ;;  %v1500_v47 = vpop.f32.mrf.mxu3  ;;  %v1293_v40 = vunpack.c.l.bf16 %v1035_v33 }
 0x29d   :  { %1509 = vmatpush.bf16.msra.mxu0 %v1358_v42  ;;  %v1488_v7 = vadd.f32 %v1487_v46, %v3652_v45  ;;  %v1309_v42 = vunpack.c.l.bf16 %v1051_v30  ;;  %v1310_v46 = vunpack.c.h.bf16 %v1051_v30 }
 0x29e   :  { %1522 = vmatpush.bf16.msra.mxu1 %v1366_v6  ;;  %v1294_v6 = vunpack.c.h.bf16 %v1035_v33 }
 0x29f   :  { %v3655_v4 = vadd.f32 %v1500_v47, %v1488_v7  ;;  %v3659_v7 = vand.u32 15, %v4187_v31 }
 0x2a0   :  { %v1222_v51 = vpop.xlane.xlu1 %1221  ;;  %v1219_v12 = vpop.xlane.xlu0 %1218 }
 0x2a1   :  { %v1267_v44 = vpop.xlane.xlu2 %1266  ;;  %v1330_v5 = vmul.f32 %v1298_v48, %v1222_v51  ;;  %v1329_v56 = vmul.f32 %v1297_v49, %v1219_v12  ;;  %v1647_v49 = vand.u32 15, %v4191_v53  ;;  %v1640_v51 = vand.u32 15, %v4188_v59 }
 0x2a2   :  { %v1345_v11 = vmul.f32 %v1313_v9, %v1267_v44 }
 0x2a3   :  { %v1357_v3 = vpack.c.bf16 %v1330_v5, %v1329_v56  ;;  %vm1757_vm5 = vcmp.eq.s32.totalorder %v1647_v49, %v3659_v7  ;;  %vm1756_vm15 = vcmp.eq.s32.totalorder %v1640_v51, %v3659_v7  ;;  %v1505_v51 = vpack.c.bf16 %v3376_v24, %v3376_v24 }
 0x2a4   :  { %v1489_v10 = vpop.f32.mrf.mxu2  ;;  %v1502_v13 = vpop.f32.mrf.mxu3  ;;  %2320 = vmatpush.msk.msra.mxu2 %vm1757_vm5, %v4061_v15  ;;  %2336 = vmatpush.msk.msra.mxu3 %vm1757_vm5, %v4061_v15  ;;  %v1605_v24 = vand.u32 15, %v4199_v50 }
 0x2a5   :  { %1510 = vmatpush.bf16.msra.mxu0 %v1357_v3  ;;  %v1292_v10 = vunpack.c.h.bf16 %v1034_v35  ;;  %v1291_v13 = vunpack.c.l.bf16 %v1034_v35  ;;  %v1584_v35 = vand.u32 15, %v4203_v57 }
 0x2a6   :  { %2321 = vmatpush.msk.msra.mxu2 %vm1756_vm15, %v4061_v15  ;;  %2337 = vmatpush.msk.msra.mxu3 %vm1756_vm15, %v4061_v15 }
 0x2a8   :  { %v1270_v19 = vpop.xlane.xlu0 %1269  ;;  %v1213_v25 = vpop.xlane.xlu1 %1212 }
 0x2a9   :  { %v1346_v27 = vmul.f32 %v1314_v29, %v1270_v19  ;;  %v1216_v39 = vpop.xlane.xlu2 %1215  ;;  %v1327_v38 = vmul.f32 %v1295_v16, %v1213_v25 }
 0x2aa   :  { %v1328_v58 = vmul.f32 %v1296_v28, %v1216_v39 }
 0x2ab   :  { %v1365_v8 = vpack.c.bf16 %v1346_v27, %v1345_v11  ;;  %v1049_v11 = vld [vmem:[#allocation7 + $0x48] sm:$0xff]   ;;  %v1032_v27 = vld [vmem:[#allocation7] sm:$0xff]  }
 0x2ac   :  { %v1356_v20 = vpack.c.bf16 %v1328_v58, %v1327_v38  ;;  %v1307_v38 = vunpack.c.l.bf16 %v1049_v11  ;;  %v1308_v58 = vunpack.c.h.bf16 %v1049_v11  ;;  %v1289_v43 = vunpack.c.l.bf16 %v1032_v27 }
 0x2ad   :  { %1523 = vmatpush.bf16.msra.mxu1 %v1365_v8  ;;  %v1290_v8 = vunpack.c.h.bf16 %v1032_v27  ;;  %v1535_v27 = vstv %s2319_s5 }
 0x2ae   :  { %1511 = vmatpush.bf16.msra.mxu0 %v1356_v20 }
 0x2b0   :  { %v1261_v0 = vpop.xlane.xlu0 %1260  ;;  %v1264_v2 = vpop.xlane.xlu1 %1263 }
 0x2b1   :  { %v1343_v17 = vmul.f32 %v1311_v52, %v1261_v0  ;;  %v1344_v21 = vmul.f32 %v1312_v18, %v1264_v2  ;;  %v1207_v23 = vpop.xlane.xlu2 %1206 }
 0x2b2   :  { %v1325_v12 = vmul.f32 %v1293_v40, %v1207_v23  ;;  %v1047_v23 = vld [vmem:[#allocation7 + $0x40] sm:$0xff]  }
 0x2b3   :  { %v1364_v32 = vpack.c.bf16 %v1344_v21, %v1343_v17  ;;  %v1306_v40 = vunpack.c.h.bf16 %v1047_v23 }
 0x2b5   :  { %1524 = vmatpush.bf16.msra.mxu1 %v1364_v32  ;;  %v1305_v32 = vunpack.c.l.bf16 %v1047_v23 }
 0x2b8   :  { %v1255_v47 = vpop.xlane.xlu1 %1254  ;;  %v1210_v48 = vpop.xlane.xlu0 %1209 }
 0x2b9   :  { %v1341_v44 = vmul.f32 %v1309_v42, %v1255_v47  ;;  %v1326_v5 = vmul.f32 %v1294_v6, %v1210_v48  ;;  %v1258_v56 = vpop.xlane.xlu2 %1257  ;;  %v1504_v42 = vpack.c.bf16 %v3366_v22, %v3366_v22  ;;  %v1612_v22 = vand.u32 15, %v4195_v41 }
 0x2ba   :  { %v1342_v1 = vmul.f32 %v1310_v46, %v1258_v56  ;;  %v1598_v56 = vand.u32 15, %v4200_v34 }
 0x2bb   :  { %v1355_v3 = vpack.c.bf16 %v1326_v5, %v1325_v12  ;;  %v1633_v12 = vand.u32 15, %v4192_v55  ;;  %v1619_v5 = vand.u32 15, %v4197_v54  ;;  %vm1752_vm1 = vcmp.eq.s32.totalorder %v1612_v22, %v3659_v7 }
 0x2bc   :  { %v1363_v9 = vpack.c.bf16 %v1342_v1, %v1341_v44  ;;  %v1626_v44 = vand.u32 15, %v4189_v63  ;;  %v1591_v1 = vand.u32 15, %v4204_v62 }
 0x2bd   :  { %1512 = vmatpush.bf16.msra.mxu0 %v1355_v3  ;;  %vm1755_vm7 = vcmp.eq.s32.totalorder %v1633_v12, %v3659_v7  ;;  %vm1753_vm15 = vcmp.eq.s32.totalorder %v1619_v5, %v3659_v7  ;;  %v1577_v3 = vand.u32 15, %v4209_v26  ;;  %v2420_v12 = vld [vmem:[%s3847_s6 + $0x20] sm:$0xff] }
 0x2be   :  { %1525 = vmatpush.bf16.msra.mxu1 %v1363_v9  ;;  %vm1754_vm5 = vcmp.eq.s32.totalorder %v1626_v44, %v3659_v7  ;;  %2322 = vmatpush.msk.msra.mxu2 %vm1755_vm7, %v4061_v15  ;;  %v1570_v9 = vand.u32 15, %v4207_v14  ;;  %v2419_v44 = vld [vmem:[%s3847_s6 + $0x18] sm:$0xff] }
 0x2bf   :  { %2338 = vmatpush.msk.msra.mxu3 %vm1755_vm7, %v4061_v15  ;;  %vm1751_vm7 = vcmp.eq.s32.totalorder %v1605_v24, %v3659_v7  ;;  %v2418_v24 = vld [vmem:[%s3847_s6 + $0x10] sm:$0xff] }
 0x2c0   :  { %v1204_v29 = vpop.xlane.xlu1 %1203  ;;  %v1201_v16 = vpop.xlane.xlu0 %1200  ;;  %2323 = vmatpush.msk.msra.mxu2 %vm1754_vm5, %v4061_v15  ;;  %vm1746_vm10 = vcmp.eq.s32.totalorder %v1570_v9, %v3659_v7 }
 0x2c1   :  { %v1249_v28 = vpop.xlane.xlu2 %1248  ;;  %v1324_v19 = vmul.f32 %v1292_v10, %v1204_v29  ;;  %v1323_v25 = vmul.f32 %v1291_v13, %v1201_v16  ;;  %2339 = vmatpush.msk.msra.mxu3 %vm1754_vm5, %v4061_v15  ;;  %vm1750_vm5 = vcmp.eq.s32.totalorder %v1598_v56, %v3659_v7  ;;  %v1563_v10 = vand.u32 15, %v4211_v36 }
 0x2c2   :  { %v1339_v18 = vmul.f32 %v1307_v38, %v1249_v28  ;;  %2324 = vmatpush.msk.msra.mxu2 %vm1753_vm15, %v4061_v15  ;;  %v1556_v13 = vand.u32 15, %v4212_v37  ;;  %v1549_v29 = vand.u32 15, %v4216_v61  ;;  %v1542_v16 = vand.u32 15, %v4215_v60 }
 0x2c3   :  { %v1354_v39 = vpack.c.bf16 %v1324_v19, %v1323_v25  ;;  %2340 = vmatpush.msk.msra.mxu3 %vm1753_vm15, %v4061_v15  ;;  %vm1748_vm15 = vcmp.eq.s32.totalorder %v1584_v35, %v3659_v7  ;;  %v1506_v19 = vperm.slane %v3655_v4, 0  ;;  %v2416_v35 = vld [vmem:[%s3847_s6] sm:$0xff] }
 0x2c4   :  { %2325 = vmatpush.msk.msra.mxu2 %vm1752_vm1, %v4061_v15  ;;  %vm1742_vm0 = vcmp.eq.s32.totalorder %v1542_v16, %v3659_v7 }
 0x2c5   :  { %1513 = vmatpush.bf16.msra.mxu0 %v1354_v39  ;;  %2341 = vmatpush.msk.msra.mxu3 %vm1752_vm1, %v4061_v15  ;;  %vm1749_vm1 = vcmp.eq.s32.totalorder %v1591_v1, %v3659_v7  ;;  %v2417_v1 = vld [vmem:[%s3847_s6 + $0x8] sm:$0xff] }
 0x2c6   :  { %2326 = vmatpush.msk.msra.mxu2 %vm1751_vm7, %v4061_v15 }
 0x2c7   :  { %2342 = vmatpush.msk.msra.mxu3 %vm1751_vm7, %v4061_v15  ;;  %vm1747_vm7 = vcmp.eq.s32.totalorder %v1577_v3, %v3659_v7 }
 0x2c8   :  { %v1252_v20 = vpop.xlane.xlu0 %1251  ;;  %v1195_v52 = vpop.xlane.xlu1 %1194  ;;  %2327 = vmatpush.msk.msra.mxu2 %vm1750_vm5, %v4061_v15 }
 0x2c9   :  { %v1340_v0 = vmul.f32 %v1308_v58, %v1252_v20  ;;  %v1198_v2 = vpop.xlane.xlu2 %1197  ;;  %v1321_v17 = vmul.f32 %v1289_v43, %v1195_v52  ;;  %2343 = vmatpush.msk.msra.mxu3 %vm1750_vm5, %v4061_v15  ;;  %vm1745_vm5 = vcmp.eq.s32.totalorder %v1563_v10, %v3659_v7 }
 0x2ca   :  { %v1322_v21 = vmul.f32 %v1290_v8, %v1198_v2  ;;  %2328 = vmatpush.msk.msra.mxu2 %vm1749_vm1, %v4061_v15 }
 0x2cb   :  { %v1362_v33 = vpack.c.bf16 %v1340_v0, %v1339_v18  ;;  %2344 = vmatpush.msk.msra.mxu3 %vm1749_vm1, %v4061_v15  ;;  %vm1744_vm1 = vcmp.eq.s32.totalorder %v1556_v13, %v3659_v7 }
 0x2cc   :  { %v1353_v30 = vpack.c.bf16 %v1322_v21, %v1321_v17  ;;  %2329 = vmatpush.msk.msra.mxu2 %vm1748_vm15, %v4061_v15 }
 0x2cd   :  { %1526 = vmatpush.bf16.msra.mxu1 %v1362_v33  ;;  %2345 = vmatpush.msk.msra.mxu3 %vm1748_vm15, %v4061_v15  ;;  %vm1743_vm15 = vcmp.eq.s32.totalorder %v1549_v29, %v3659_v7 }
 0x2ce   :  { %1514 = vmatpush.bf16.msra.mxu0 %v1353_v30  ;;  %2330 = vmatpush.msk.msra.mxu2 %vm1747_vm7, %v4061_v15 }
 0x2cf   :  { %2346 = vmatpush.msk.msra.mxu3 %vm1747_vm7, %v4061_v15 }
 0x2d0   :  { %v1243_v6 = vpop.xlane.xlu0 %1242  ;;  %v1246_v46 = vpop.xlane.xlu1 %1245  ;;  %2331 = vmatpush.msk.msra.mxu2 %vm1746_vm10, %v4061_v15 }
 0x2d1   :  { %v1337_v47 = vmul.f32 %v1305_v32, %v1243_v6  ;;  %1515 = vmatmul.bf16.vlgmr.msra.gmra.mxu0 %v1504_v42  ;;  %v1338_v48 = vmul.f32 %v1306_v40, %v1246_v46  ;;  %2347 = vmatpush.msk.msra.mxu3 %vm1746_vm10, %v4061_v15 }
 0x2d2   :  { %2332 = vmatpush.msk.msra.mxu2 %vm1745_vm5, %v4061_v15 }
 0x2d3   :  { %v1361_v49 = vpack.c.bf16 %v1338_v48, %v1337_v47  ;;  %2348 = vmatpush.msk.msra.mxu3 %vm1745_vm5, %v4061_v15  ;;  %v2423_v48 = vld [vmem:[%s3847_s6 + $0x38] sm:$0xff] }
 0x2d4   :  { %2333 = vmatpush.msk.msra.mxu2 %vm1744_vm1, %v4061_v15  ;;  %2014 = vmatpush.bf16.msrb.mxu0 %v2423_v48  ;;  %v1866_v48 = vld [vmem:[%s3847_s6 + $0x20] sm:$0xff]  }
 0x2d5   :  { %1527 = vmatpush.bf16.msra.mxu1 %v1361_v49  ;;  %2349 = vmatpush.msk.msra.mxu3 %vm1744_vm1, %v4061_v15  ;;  %v2422_v49 = vld [vmem:[%s3847_s6 + $0x30] sm:$0xff] }
 0x2d6   :  { %2334 = vmatpush.msk.msra.mxu2 %vm1743_vm15, %v4061_v15 }
 0x2d7   :  { %2350 = vmatpush.msk.msra.mxu3 %vm1743_vm15, %v4061_v15 }
 0x2d8   :  { %1528 = vmatmul.bf16.vlgmr.msra.gmra.mxu1 %v1505_v51  ;;  %2335 = vmatpush.msk.msra.mxu2 %vm1742_vm0, %v4061_v15  ;;  %v2421_v51 = vld [vmem:[%s3847_s6 + $0x28] sm:$0xff] }
 0x2d9   :  { %2351 = vmatpush.msk.msra.mxu3 %vm1742_vm0, %v4061_v15  ;;  %2015 = vmatpush.bf16.msrb.mxu0 %v2422_v49 }
 0x2dd   :  { %2016 = vmatpush.bf16.msrb.mxu0 %v2421_v51 }
 0x2e1   :  { %2017 = vmatpush.bf16.msrb.mxu0 %v2420_v12 }
 0x2e5   :  { %2018 = vmatpush.bf16.msrb.mxu0 %v2419_v44  ;;  %v1931_v44 = vunpack.c.h.bf16 %v1866_v48 }
 0x2e9   :  { %2019 = vmatpush.bf16.msrb.mxu0 %v2418_v24 }
 0x2ed   :  { %2020 = vmatpush.bf16.msrb.mxu0 %v2417_v1 }
 0x2f1   :  { %2021 = vmatpush.bf16.msrb.mxu0 %v2416_v35 }
 0x34e   :  { %v1516_v28 = vpop.f32.mrf.mxu0 }
 0x34f   :  { %v1517_v25 = vadd.f32 %v1516_v28, %v1506_v19 }
 0x355   :  { %v1529_v11 = vpop.f32.mrf.mxu1 }
 0x356   :  { %v1518_v39 = vpop.f32.mrf.mxu0  ;;  %v1530_v38 = vadd.f32 %v1529_v11, %v1517_v25 }
 0x358   :  { %vm1534_vm10 = vcmp.ge.f32.partialorder %v1530_v38, 0.0  ;;  %v1536_v7 = vmul.f32 %v1535_v27, %v1530_v38 }
 0x35a   :  { %v3729_v58 = vsel %vm1534_vm10, %v1530_v38, %v1536_v7 }
 0x35b   :  { %v1774_v43 = vsel %vm787_vm13, %v3729_v58, 0.0 }
 0x35c   :  { %v1775_v8 = vrot.slane %v1774_v43, 4 }
 0x35d   :  { %v1531_v20 = vpop.f32.mrf.mxu1 }
 0x35e   :  { %v1776_v52 = vadd.f32 %v1775_v8, %v1774_v43 }
 0x360   :  { %v1777_v18 = vrot.slane %v1776_v52, 2 }
 0x362   :  { %v1778_v0 = vadd.f32 %v1777_v18, %v1776_v52 }
 0x364   :  { %v1779_v15 = vrot.slane %v1778_v0, 1 }
 0x366   :  { %v1780_v2 = vadd.f32 %v1779_v15, %v1778_v0 }
 0x368   :  { %1797 = vmatmul.f32.vlgmr.msra.gmra.mxu2 %v1780_v2 }
 0x3eb   :  { %v1798_v4 = vpop.f32.mrf.mxu2 }
 0x3ec   :  { %v1801_v17 = vmul.f32 0.0625, %v1798_v4 }
 0x3ee   :  { %v1802_v21 = vperm.slane %v1801_v17, 0 }
 0x3f0   :  { %v1803_v23 = vsub.f32 %v3729_v58, %v1802_v21 }
 0x3f2   :  { %v1804_v33 = vmul.f32 %v1803_v23, %v1803_v23 }
 0x3f4   :  { %v1805_v30 = vsel %vm787_vm13, %v1804_v33, 0.0 }
 0x3f5   :  { %v1806_v32 = vrot.slane %v1805_v30, 4 }
 0x3f7   :  { %v1807_v40 = vadd.f32 %v1806_v32, %v1805_v30 }
 0x3f9   :  { %v1808_v42 = vrot.slane %v1807_v40, 2 }
 0x3fb   :  { %v1809_v6 = vadd.f32 %v1808_v42, %v1807_v40 }
 0x3fd   :  { %v1810_v46 = vrot.slane %v1809_v6, 1 }
 0x3ff   :  { %v1811_v47 = vadd.f32 %v1810_v46, %v1809_v6 }
 0x401   :  { %1828 = vmatmul.f32.vlgmr.msra.gmra.mxu3 %v1811_v47 }
 0x484   :  { %v1829_v5 = vpop.f32.mrf.mxu3 }
 0x485   :  { %v1832_v22 = vmul.f32 0.0625, %v1829_v5  ;;  %v1930_v5 = vunpack.c.l.bf16 %v1866_v48 }
 0x487   :  { %v1833_v56 = vadd.f32 1e-05, %v1832_v22 }
 0x489   :  { %2437 = vrsqrt.f32 %v1833_v56  ;;  %vm1840_vm0 = vweird.f32 %v1833_v56 }
 0x48f   :  { %v2438_v3 = vpop.eup %2437 }
 0x490   :  { %v1835_v9 = vmul.f32 %v2438_v3, %v1833_v56  ;;  %vm1841_vm13 = vweird.f32 %v2438_v3 }
 0x491   :  { %vm1842_vm7 = vmor %vm1840_vm0, %vm1841_vm13 }
 0x492   :  { %v1836_v10 = vmul.f32 %v2438_v3, %v1835_v9  ;;  %v1863_v9 = vld [vmem:[%s3847_s6 + $0x18] sm:$0xff]  }
 0x494   :  { %v1837_v13 = vmul.f32 0.5, %v1836_v10 }
 0x496   :  { %v1838_v29 = vsub.f32 1.5, %v1837_v13 }
 0x498   :  { %v1839_v16 = vmul.f32 %v2438_v3, %v1838_v29  ;;  %v1862_v29 = vld [vmem:[%s3847_s6 + $0x10] sm:$0xff]  }
 0x49a   :  { %v1843_v28 = vsel %vm1842_vm7, %v2438_v3, %v1839_v16  ;;  %v1928_v16 = vunpack.c.l.bf16 %v1863_v9 }
 0x49b   :  { %v1845_v19 = vrot.slane %v1843_v28, 7  ;;  %v1929_v28 = vunpack.c.h.bf16 %v1863_v9 }
 0x49d   :  { %v1847_v25 = vmul.f32 %v1845_v19, %v3652_v45  ;;  %v1927_v19 = vunpack.c.h.bf16 %v1862_v29 }
 0x49f   :  { %v1849_v11 = vrot.slane %v1847_v25, 1  ;;  %v1873_v27 = vperm.slane %v1847_v25, 1  ;;  %v1926_v25 = vunpack.c.l.bf16 %v1862_v29 }
 0x4a1   :  { %v1889_v39 = vsel %vm1093_vm14, %v1873_v27, 0.0  ;;  %v1888_v38 = vsel %vm1091_vm3, %v1873_v27, 0.0  ;;  %v1886_v7 = vsel %vm1087_vm11, %v1873_v27, 0.0  ;;  %v1851_v43 = vmul.f32 %v1849_v11, %v1801_v17 }
 0x4a2   :  { %1920 = vadd.xlane.f32.xlu0 %v1889_v39  ;;  %1918 = vadd.xlane.f32.xlu2 %v1888_v38  ;;  %v1887_v53 = vsel %vm1089_vm12, %v1873_v27, 0.0  ;;  %v1884_v59 = vsel %vm1083_vm4, %v1873_v27, 0.0  ;;  %v1885_v63 = vsel %vm1085_vm6, %v1873_v27, 0.0  ;;  %v1882_v55 = vsel %vm1079_vm9, %v1873_v27, 0.0 }
 0x4a3   :  { %1914 = vadd.xlane.f32.xlu1 %v1886_v7  ;;  %v1853_v8 = vrot.slane %v1851_v43, 6  ;;  %v1880_v41 = vsel %vm1075_vm2, %v1873_v27, 0.0  ;;  %vm4219_vm3 = vcmp.eq.s32.totalorder %v4204_v62, %v4187_v31  ;;  %vm4220_vm11 = vcmp.eq.s32.totalorder %v4207_v14, %v4187_v31  ;;  %v1860_v43 = vld [vmem:[%s3847_s6 + $0x8] sm:$0xff]  }
 0x4a4   :  { %v1881_v54 = vsel %vm4219_vm3, %v1873_v27, 0.0  ;;  %v1878_v50 = vsel %vm4220_vm11, %v1873_v27, 0.0  ;;  %vm4221_vm14 = vcmp.eq.s32.totalorder %v4209_v26, %v4187_v31  ;;  %vm4222_vm12 = vcmp.eq.s32.totalorder %v4211_v36, %v4187_v31  ;;  %v1872_v36 = vld [vmem:[%s3847_s6 + $0x38] sm:$0xff]  }
 0x4a5   :  { %v1855_v20 = vsub.f32 %v3652_v45, %v1853_v8  ;;  %v1883_v45 = vsel %vm1081_vm8, %v1873_v27, 0.0  ;;  %v1879_v34 = vsel %vm4221_vm14, %v1873_v27, 0.0  ;;  %v1877_v57 = vsel %vm4222_vm12, %v1873_v27, 0.0 }
 0x4a6   :  { %vm4223_vm4 = vcmp.eq.s32.totalorder %v4212_v37, %v4187_v31  ;;  %vm4224_vm6 = vcmp.eq.s32.totalorder %v4215_v60, %v4187_v31  ;;  %vm4225_vm8 = vcmp.eq.s32.totalorder %v4216_v61, %v4187_v31  ;;  %v1937_v0 = vunpack.c.h.bf16 %v1872_v36  ;;  %v1869_v60 = vld [vmem:[%s3847_s6 + $0x30] sm:$0xff]   ;;  %v1868_v31 = vld [vmem:[%s3847_s6 + $0x28] sm:$0xff]  }
 0x4a7   :  { %v1962_v52 = vpack.c.bf16 %v1855_v20, %v1855_v20  ;;  %v1876_v62 = vsel %vm4223_vm4, %v1873_v27, 0.0  ;;  %v1874_v14 = vsel %vm4224_vm6, %v1873_v27, 0.0  ;;  %v1875_v26 = vsel %vm4225_vm8, %v1873_v27, 0.0 }
 0x4a8   :  { %v1936_v15 = vunpack.c.l.bf16 %v1872_v36  ;;  %v1934_v61 = vunpack.c.l.bf16 %v1869_v60  ;;  %v1935_v33 = vunpack.c.h.bf16 %v1869_v60  ;;  %v1933_v30 = vunpack.c.h.bf16 %v1868_v31 }
 0x4a9   :  { %v1964_v18 = vrot.slane %v1962_v52, 1  ;;  %v1932_v32 = vunpack.c.l.bf16 %v1868_v31  ;;  %vm2042_vm9 = vcmask 517120  }
 0x4aa   :  { %1916 = vadd.xlane.f32.xlu2 %v1887_v53  ;;  %1910 = vadd.xlane.f32.xlu0 %v1884_v59  ;;  %v1925_v59 = vunpack.c.h.bf16 %v1860_v43 }
 0x4ab   :  { %1912 = vadd.xlane.f32.xlu1 %v1885_v63  ;;  %2022 = vmatmul.bf16.vlgmr.msrb.gmra.mxu0 %v1964_v18  ;;  %v1924_v63 = vunpack.c.l.bf16 %v1860_v43 }
 0x4b2   :  { %1908 = vadd.xlane.f32.xlu0 %v1883_v45  ;;  %1906 = vadd.xlane.f32.xlu2 %v1882_v55 }
 0x4b3   :  { %1902 = vadd.xlane.f32.xlu1 %v1880_v41 }
 0x4ba   :  { %1904 = vadd.xlane.f32.xlu2 %v1881_v54  ;;  %1898 = vadd.xlane.f32.xlu0 %v1878_v50  ;;  %v1857_v50 = vld [vmem:[%s3847_s6] sm:$0xff]   ;;  %s2539_s6 = smov [#allocation9]  }
 0x4bb   :  { %1900 = vadd.xlane.f32.xlu1 %v1879_v34  ;;  %s2049_s9 = sshll.u32 %s2539_s6, 4  ;;  %s2050_s9 = int_to_ptr.vmem [resolvable:$true] %s2049_s9 }
 0x4c2   :  { %1896 = vadd.xlane.f32.xlu0 %v1877_v57  ;;  %1894 = vadd.xlane.f32.xlu2 %v1876_v62  ;;  %v1922_v57 = vunpack.c.l.bf16 %v1857_v50  ;;  %v1923_v62 = vunpack.c.h.bf16 %v1857_v50 }
 0x4c3   :  { %1890 = vadd.xlane.f32.xlu1 %v1874_v14 }
 0x4ca   :  { %1892 = vadd.xlane.f32.xlu2 %v1875_v26 }
 0x515   :  { %v1921_v37 = vpop.xlane.xlu0 %1920  ;;  %v1919_v2 = vpop.xlane.xlu2 %1918 }
 0x516   :  { %v1953_v4 = vmul.f32 %v1937_v0, %v1921_v37  ;;  %v1952_v17 = vmul.f32 %v1936_v15, %v1919_v2  ;;  %v1915_v21 = vpop.xlane.xlu1 %1914  ;;  %v2027_v37 = vpack.c.bf16 %v3729_v58, %v3729_v58  ;;  %v1856_v2 = vld [vmem:[%s3848_s7] sm:$0x1] }
 0x517   :  { %v1950_v6 = vmul.f32 %v1934_v61, %v1915_v21 }
 0x518   :  { %v1961_v23 = vpack.c.bf16 %v1953_v4, %v1952_v17 }
 0x51a   :  { %2029 = vmatpush.bf16.msrb.mxu1 %v1961_v23 }
 0x51d   :  { %v1917_v40 = vpop.xlane.xlu2 %1916  ;;  %v1911_v42 = vpop.xlane.xlu0 %1910 }
 0x51e   :  { %v1951_v46 = vmul.f32 %v1935_v33, %v1917_v40  ;;  %v1913_v47 = vpop.xlane.xlu1 %1912  ;;  %v1948_v12 = vmul.f32 %v1932_v32, %v1911_v42 }
 0x51f   :  { %v1949_v51 = vmul.f32 %v1933_v30, %v1913_v47 }
 0x520   :  { %v1960_v49 = vpack.c.bf16 %v1951_v46, %v1950_v6 }
 0x521   :  { %v1959_v22 = vpack.c.bf16 %v1949_v51, %v1948_v12 }
 0x522   :  { %2030 = vmatpush.bf16.msrb.mxu1 %v1960_v49 }
 0x525   :  { %v1909_v24 = vpop.xlane.xlu0 %1908  ;;  %v1907_v56 = vpop.xlane.xlu2 %1906 }
 0x526   :  { %v1947_v1 = vmul.f32 %v1931_v44, %v1909_v24  ;;  %v1946_v35 = vmul.f32 %v1930_v5, %v1907_v56  ;;  %v1903_v3 = vpop.xlane.xlu1 %1902  ;;  %2031 = vmatpush.bf16.msrb.mxu1 %v1959_v22 }
 0x527   :  { %v1944_v39 = vmul.f32 %v1928_v16, %v1903_v3 }
 0x528   :  { %v1958_v10 = vpack.c.bf16 %v1947_v1, %v1946_v35  ;;  %v2023_v13 = vpop.f32.mrf.mxu0 }
 0x529   :  { %v2024_v4 = vadd.f32 %v2023_v13, %v1856_v2 }
 0x52a   :  { %2032 = vmatpush.bf16.msrb.mxu1 %v1958_v10 }
 0x52b   :  { %v2028_v17 = vperm.slane %v2024_v4, 0 }
 0x52d   :  { %v1905_v11 = vpop.xlane.xlu2 %1904  ;;  %v1899_v27 = vpop.xlane.xlu0 %1898 }
 0x52e   :  { %v1945_v38 = vmul.f32 %v1929_v28, %v1905_v11  ;;  %v1901_v7 = vpop.xlane.xlu1 %1900  ;;  %v1942_v52 = vmul.f32 %v1926_v25, %v1899_v27 }
 0x52f   :  { %v1943_v20 = vmul.f32 %v1927_v19, %v1901_v7 }
 0x530   :  { %v1957_v8 = vpack.c.bf16 %v1945_v38, %v1944_v39  ;;  %v2025_v53 = vpop.f32.mrf.mxu0 }
 0x531   :  { %v1956_v18 = vpack.c.bf16 %v1943_v20, %v1942_v52 }
 0x532   :  { %2033 = vmatpush.bf16.msrb.mxu1 %v1957_v8 }
 0x535   :  { %v1897_v45 = vpop.xlane.xlu0 %1896  ;;  %v1895_v55 = vpop.xlane.xlu2 %1894 }
 0x536   :  { %v1941_v41 = vmul.f32 %v1925_v59, %v1897_v45  ;;  %v1940_v54 = vmul.f32 %v1924_v63, %v1895_v55  ;;  %2034 = vmatpush.bf16.msrb.mxu1 %v1956_v18  ;;  %v1891_v14 = vpop.xlane.xlu1 %1890 }
 0x537   :  { %v1938_v36 = vmul.f32 %v1922_v57, %v1891_v14 }
 0x538   :  { %v1955_v34 = vpack.c.bf16 %v1941_v41, %v1940_v54 }
 0x53a   :  { %2035 = vmatpush.bf16.msrb.mxu1 %v1955_v34 }
 0x53d   :  { %v1893_v26 = vpop.xlane.xlu2 %1892 }
 0x53e   :  { %v1939_v0 = vmul.f32 %v1923_v62, %v1893_v26 }
 0x540   :  { %v1954_v15 = vpack.c.bf16 %v1939_v0, %v1938_v36 }
 0x542   :  { %2036 = vmatpush.bf16.msrb.mxu1 %v1954_v15 }
 0x545   :  { %2037 = vmatmul.bf16.vlgmr.msrb.gmra.mxu1 %v2027_v37 }
 0x5c2   :  { %v2038_v21 = vpop.f32.mrf.mxu1 }
 0x5c3   :  { %v2039_v60 = vadd.f32 %v2038_v21, %v2028_v17 }
 0x5c5   :  { %2043 = vst.msk [vmem:[#allocation9] sm:$0x3] %vm2042_vm9, %v2039_v60 }
 0x5c6   :  { %2054 = dma.vmem_to_hbm [thread:$0]  %s2050_s9, 32, %s2052_s12, [#allocation4]  }
 0x5ca   :  { %v2040_v58 = vpop.f32.mrf.mxu1 }
 0x5cb   :  { %2529 = dma.done.wait [#allocation4], 32  }
 0x5cc   :  { %2530 = vsyncadd [#allocation4], 4294967264 }
 0x5cd   :  { %2059 = vsyncpa [#allocation3], 1 }
 0x5ce   :  { %2060 = vsyncpa [#allocation8], 1 }
 0x5cf   :  { %2061 = vsyncpa [#allocation4], 1 }
 0x5d0   :  { %2062 = vsyncpa [#allocation5], 1 }

</bundles_post_ra>
